<compile_context>
chip_gen: v7x
topology: tpu7x:2x2x1
jax: 0.10.0
libtpu: 0.0.40
codegen_flags: <defaults>
</compile_context>

<pallas_src>
import functools
import math

import jax
import jax.numpy as jnp
from jax.experimental import pallas as pl
from jax.experimental.pallas import tpu as pltpu


# ---------------------------------------------------------------------------
# Wrapper-side helpers
# ---------------------------------------------------------------------------
def _block_diag_mask(num_items, item_len):
    """Additive attention mask: 0 within a batch item, -1e30 across items."""
    ids = jnp.arange(num_items * item_len) // item_len
    same = ids[:, None] == ids[None, :]
    return jnp.where(same, 0.0, -1e30).astype(jnp.float32)


def _pick_batch_block(batch, seq_len, num_vars, target_rows=128):
    """Largest batch block bb (divisor of B) with bb*T <= target_rows whose row
    counts keep the (8, 128) BlockSpec constraint satisfied."""
    valid = [bb for bb in range(1, batch + 1)
             if batch % bb == 0
             and (bb == batch
                  or ((bb * seq_len) % 8 == 0 and (bb * num_vars) % 8 == 0))]
    small = [bb for bb in valid if bb * seq_len <= max(target_rows, seq_len)]
    return max(small) if small else min(valid)


# ---------------------------------------------------------------------------
# In-kernel helper: one (Linear -> MultiheadAttention) branch on a token tile.
# All weights arrive pre-transposed so every matmul is jnp.dot(x, W).
# ---------------------------------------------------------------------------
def _attention_branch(tok, w_proj, b_proj, w_qkv, b_qkv, w_out3, b_out, mask,
                      *, num_heads, embed_dim):
    # tok    : (M, F)   M = bb * S tokens (bb batch items stacked on rows)
    # w_proj : (F, E)      b_proj : (1, E)
    # w_qkv  : (E, 3E)     b_qkv  : (1, 3E)   packed [q; k; v], pre-transposed
    # w_out3 : (H, hd, E)  b_out  : (1, E)    out_proj weight split per head
    # mask   : (M, M)      additive block-diagonal mask (keeps attention inside
    #                       each batch item when several items share the tile)
    E, H = embed_dim, num_heads
    hd = E // H
    scale = 1.0 / math.sqrt(hd)

    # branch projection Linear(F -> E); M-row matmul fills the MXU better
    proj = jnp.dot(tok, w_proj, preferred_element_type=jnp.float32) + b_proj     # (M, E)
    # packed q/k/v in a single MXU matmul
    qkv = jnp.dot(proj, w_qkv, preferred_element_type=jnp.float32) + b_qkv       # (M, 3E)

    # head-major stacks (H, M, hd) from static lane slices
    qh = jnp.stack([qkv[:, h * hd:(h + 1) * hd] for h in range(H)], axis=0)
    kh = jnp.stack([qkv[:, E + h * hd:E + (h + 1) * hd] for h in range(H)], axis=0)
    vh = jnp.stack([qkv[:, 2 * E + h * hd:2 * E + (h + 1) * hd] for h in range(H)], axis=0)

    # head-batched scaled dot-product attention with block-diagonal masking
    s = jnp.einsum("hqd,hkd->hqk", qh, kh, preferred_element_type=jnp.float32)
    s = s * scale + mask
    s = s - jnp.max(s, axis=-1, keepdims=True)
    p = jnp.exp(s)
    p = p * pl.reciprocal(jnp.sum(p, axis=-1, keepdims=True), approx=False)
    ctx = jnp.einsum("hqk,hkd->hqd", p, vh, preferred_element_type=jnp.float32)   # (H, M, hd)

    # out-projection folded per head: sum_h ctx_h @ W_o[h] == concat_h(ctx_h) @ W_o
    outh = jnp.einsum("hsd,hde->hse", ctx, w_out3, preferred_element_type=jnp.float32)
    return jnp.sum(outh, axis=0) + b_out                                          # (M, E)


# ---------------------------------------------------------------------------
# Fused kernel: both branches + broadcast-combine, one grid step per bb items.
# ---------------------------------------------------------------------------
def dual_branch_kernel(xt_ref, xv_ref, mt_ref, mv_ref,
                       wtp_ref, wvp_ref, wqkv_ref, wout_ref,
                       bproj_ref, bqkv_ref, bout_ref, o_ref,
                       *, num_heads, seq_len, num_vars, embed_dim, bb):
    T, D, E = seq_len, num_vars, embed_dim

    # time branch: bb*T tokens of (D*E) features
    t_out = _attention_branch(
        xt_ref[...], wtp_ref[...], bproj_ref[0:1, :], wqkv_ref[0], bqkv_ref[0:1, :],
        wout_ref[0], bout_ref[0:1, :], mt_ref[...],
        num_heads=num_heads, embed_dim=E)                                 # (bb*T, E)

    # var branch: bb*D tokens of (T*E) features (layout built in the wrapper)
    v_out = _attention_branch(
        xv_ref[...], wvp_ref[...], bproj_ref[1:2, :], wqkv_ref[1], bqkv_ref[1:2, :],
        wout_ref[1], bout_ref[1:2, :], mv_ref[...],
        num_heads=num_heads, embed_dim=E)                                 # (bb*D, E)

    # broadcast combine, one full-width lane-dense (T, D*E = 128) store per item:
    #   out[b*T + t, d*E:(d+1)*E] = t_out[b*T + t] + v_out[b*D + d]
    for b in range(bb):
        t_b = t_out[b * T:(b + 1) * T, :]                                  # (T, E)
        row = jnp.concatenate(
            [t_b + v_out[b * D + d:b * D + d + 1, :] for d in range(D)], axis=1)
        o_ref[b * T:(b + 1) * T, :] = row.astype(o_ref.dtype)


# ---------------------------------------------------------------------------
# Wrapper: layout plumbing (weight transposes, free reshapes) + one pallas_call.
# ---------------------------------------------------------------------------
def dual_branch_attention(x, params, *, num_heads, batch_block=None):
    B, T, D, E = x.shape
    H = num_heads
    hd = E // H
    bb = batch_block if batch_block is not None else _pick_batch_block(B, T, D)

    # lane-dense flat token layouts (wrapper reshape/transpose = layout plumbing,
    # negligible HBM traffic vs. the removed in-kernel lane gathers)
    x_time = x.reshape(B * T, D * E)
    x_var = jnp.transpose(x, (0, 2, 1, 3)).reshape(B * D, T * E)

    # tiny additive masks that keep attention within each batch item
    mask_t = _block_diag_mask(bb, T)
    mask_v = _block_diag_mask(bb, D)

    # weights pre-transposed / stacked once so the kernel never transposes
    wt_p = params["time_proj_w"].T                                          # (D*E, E)
    wv_p = params["var_proj_w"].T                                           # (T*E, E)
    w_qkv = jnp.stack([params["time_in_w"].T, params["var_in_w"].T])        # (2, E, 3E)
    w_out = jnp.stack([params["time_out_w"].T.reshape(H, hd, E),
                       params["var_out_w"].T.reshape(H, hd, E)])            # (2, H, hd, E)
    b_proj = jnp.concatenate([params["time_proj_b"], params["var_proj_b"]])  # (2, E)
    b_qkv = jnp.concatenate([params["time_in_b"], params["var_in_b"]])       # (2, 3E)
    b_out = jnp.concatenate([params["time_out_b"], params["var_out_b"]])     # (2, E)

    const2 = lambda b: (0, 0)
    const3 = lambda b: (0, 0, 0)
    const4 = lambda b: (0, 0, 0, 0)

    kernel = functools.partial(dual_branch_kernel, num_heads=H, seq_len=T,
                               num_vars=D, embed_dim=E, bb=bb)
    out = pl.pallas_call(
        kernel,
        out_shape=jax.ShapeDtypeStruct((B * T, D * E), jnp.float32),
        grid=(B // bb,),
        in_specs=[
            pl.BlockSpec((bb * T, D * E), lambda b: (b, 0)),   # time tokens
            pl.BlockSpec((bb * D, T * E), lambda b: (b, 0)),   # var tokens
            pl.BlockSpec((bb * T, bb * T), const2),            # time block-diag mask
            pl.BlockSpec((bb * D, bb * D), const2),            # var block-diag mask
            pl.BlockSpec((D * E, E), const2),                  # time proj W
            pl.BlockSpec((T * E, E), const2),                  # var proj W
            pl.BlockSpec((2, E, 3 * E), const3),               # packed qkv W (both branches)
            pl.BlockSpec((2, H, hd, E), const4),               # per-head out W (both branches)
            pl.BlockSpec((2, E), const2),                      # proj biases
            pl.BlockSpec((2, 3 * E), const2),                  # qkv biases
            pl.BlockSpec((2, E), const2),                      # out biases
        ],
        out_specs=pl.BlockSpec((bb * T, D * E), lambda b: (b, 0)),
        compiler_params=pltpu.CompilerParams(dimension_semantics=("parallel",)),
    )(x_time, x_var, mask_t, mask_v, wt_p, wv_p, w_qkv, w_out, b_proj, b_qkv, b_out)
    return out.reshape(B, T, D, E)                    # contiguous -> free


# ---------------------------------------------------------------------------
# Pure-JAX reference (mirrors the PyTorch forward, eval mode)
# ---------------------------------------------------------------------------
def _ref_branch(xf, pw, pb, inw, inb, ow, ob, num_heads):
    E = pw.shape[0]
    hd = E // num_heads
    proj = xf @ pw.T + pb[0]
    q = proj @ inw[0:E].T + inb[0, 0:E]
    k = proj @ inw[E:2 * E].T + inb[0, E:2 * E]
    v = proj @ inw[2 * E:].T + inb[0, 2 * E:]
    B, S, _ = proj.shape
    q = q.reshape(B, S, num_heads, hd).transpose(0, 2, 1, 3)
    k = k.reshape(B, S, num_heads, hd).transpose(0, 2, 1, 3)
    v = v.reshape(B, S, num_heads, hd).transpose(0, 2, 1, 3)
    s = jnp.einsum("bhqd,bhkd->bhqk", q, k) / math.sqrt(hd)
    p = jax.nn.softmax(s, axis=-1)
    ctx = jnp.einsum("bhqk,bhkd->bhqd", p, v).transpose(0, 2, 1, 3).reshape(B, S, E)
    return ctx @ ow.T + ob[0]


def reference(x, params, num_heads):
    B, T, D, E = x.shape
    t = _ref_branch(x.reshape(B, T, D * E), params["time_proj_w"],
                    params["time_proj_b"], params["time_in_w"], params["time_in_b"],
                    params["time_out_w"], params["time_out_b"], num_heads)
    v = _ref_branch(jnp.transpose(x, (0, 2, 1, 3)).reshape(B, D, T * E),
                    params["var_proj_w"], params["var_proj_b"],
                    params["var_in_w"], params["var_in_b"],
                    params["var_out_w"], params["var_out_b"], num_heads)
    return t[:, :, None, :] + v[:, None, :, :]


if __name__ == "__main__":
    B, T, D, E, H = 2, 8, 4, 32, 4   # batch, seq_len, num_vars, embed_dim, heads
    key = jax.random.PRNGKey(0)
    ks = jax.random.split(key, 13)

    def init(k, shape, scale=0.1):
        return scale * jax.random.normal(k, shape, jnp.float32)

    params = {
        # time branch: Linear(D*E -> E) + MHA(E, H)
        "time_proj_w": init(ks[0], (E, D * E)),
        "time_proj_b": init(ks[1], (1, E)),
        "time_in_w":   init(ks[2], (3 * E, E)),
        "time_in_b":   init(ks[3], (1, 3 * E)),
        "time_out_w":  init(ks[4], (E, E)),
        "time_out_b":  init(ks[5], (1, E)),
        # var branch: Linear(T*E -> E) + MHA(E, H)
        "var_proj_w":  init(ks[6], (E, T * E)),
        "var_proj_b":  init(ks[7], (1, E)),
        "var_in_w":    init(ks[8], (3 * E, E)),
        "var_in_b":    init(ks[9], (1, 3 * E)),
        "var_out_w":   init(ks[10], (E, E)),
        "var_out_b":   init(ks[11], (1, E)),
    }
    x = jax.random.normal(ks[12], (B, T, D, E), jnp.float32)

    fwd = jax.jit(functools.partial(dual_branch_attention, num_heads=H))
    out = jax.block_until_ready(fwd(x, params))
    assert out.shape == (B, T, D, E), out.shape

    ref = reference(x, params, H)
    max_err = float(jnp.max(jnp.abs(out - ref)))
    assert jnp.allclose(out, ref, atol=2e-3, rtol=2e-3), max_err

    print("KERNEL_OK")
</pallas_src>

<mosaic_0001>
module attributes {stable_mosaic.version = 11 : i64} {
  func.func @dual_branch_kernel(%arg0: i32, %arg1: memref<16x128xf32, #tpu.memory_space<vmem>>, %arg2: memref<8x256xf32, #tpu.memory_space<vmem>>, %arg3: memref<16x16xf32, #tpu.memory_space<vmem>>, %arg4: memref<8x8xf32, #tpu.memory_space<vmem>>, %arg5: memref<128x32xf32, #tpu.memory_space<vmem>>, %arg6: memref<256x32xf32, #tpu.memory_space<vmem>>, %arg7: memref<2x32x96xf32, #tpu.memory_space<vmem>>, %arg8: memref<2x4x8x32xf32, #tpu.memory_space<vmem>>, %arg9: memref<2x32xf32, #tpu.memory_space<vmem>>, %arg10: memref<2x96xf32, #tpu.memory_space<vmem>>, %arg11: memref<2x32xf32, #tpu.memory_space<vmem>>, %arg12: memref<16x128xf32, #tpu.memory_space<vmem>>) attributes {dimension_semantics = [#tpu.dimension_semantics<parallel>], iteration_bounds = array<i64: 1>, scalar_prefetch = 0 : i64, scratch_operands = 0 : i64, tpu.core_type = #tpu.core_type<tc>, window_params = [{transform_indices = @transform_0, window_bounds = array<i64: 16, 128>}, {transform_indices = @transform_1, window_bounds = array<i64: 8, 256>}, {pipeline_mode = #tpu.pipeline_mode<synchronous>, transform_indices = @transform_2, window_bounds = array<i64: 16, 16>}, {pipeline_mode = #tpu.pipeline_mode<synchronous>, transform_indices = @transform_3, window_bounds = array<i64: 8, 8>}, {pipeline_mode = #tpu.pipeline_mode<synchronous>, transform_indices = @transform_4, window_bounds = array<i64: 128, 32>}, {pipeline_mode = #tpu.pipeline_mode<synchronous>, transform_indices = @transform_5, window_bounds = array<i64: 256, 32>}, {pipeline_mode = #tpu.pipeline_mode<synchronous>, transform_indices = @transform_6, window_bounds = array<i64: 2, 32, 96>}, {pipeline_mode = #tpu.pipeline_mode<synchronous>, transform_indices = @transform_7, window_bounds = array<i64: 2, 4, 8, 32>}, {pipeline_mode = #tpu.pipeline_mode<synchronous>, transform_indices = @transform_8, window_bounds = array<i64: 2, 32>}, {pipeline_mode = #tpu.pipeline_mode<synchronous>, transform_indices = @transform_9, window_bounds = array<i64: 2, 96>}, {pipeline_mode = #tpu.pipeline_mode<synchronous>, transform_indices = @transform_10, window_bounds = array<i64: 2, 32>}, {transform_indices = @transform_11, window_bounds = array<i64: 16, 128>}]} {
    %c0 = arith.constant 0 : index
    %c0_0 = arith.constant 0 : index
    %0 = vector.load %arg1[%c0, %c0_0] : memref<16x128xf32, #tpu.memory_space<vmem>>, vector<16x128xf32>
    %c0_1 = arith.constant 0 : index
    %c0_2 = arith.constant 0 : index
    %1 = vector.load %arg5[%c0_1, %c0_2] : memref<128x32xf32, #tpu.memory_space<vmem>>, vector<128x32xf32>
    %c0_3 = arith.constant 0 : index
    %c0_4 = arith.constant 0 : index
    %2 = vector.load %arg9[%c0_3, %c0_4] : memref<2x32xf32, #tpu.memory_space<vmem>>, vector<1x32xf32>
    %c0_5 = arith.constant 0 : index
    %c0_6 = arith.constant 0 : index
    %c0_7 = arith.constant 0 : index
    %3 = vector.load %arg7[%c0_5, %c0_6, %c0_7] : memref<2x32x96xf32, #tpu.memory_space<vmem>>, vector<1x32x96xf32>
    %4 = vector.shape_cast %3 : vector<1x32x96xf32> to vector<32x96xf32>
    %c0_8 = arith.constant 0 : index
    %c0_9 = arith.constant 0 : index
    %5 = vector.load %arg10[%c0_8, %c0_9] : memref<2x96xf32, #tpu.memory_space<vmem>>, vector<1x96xf32>
    %c0_10 = arith.constant 0 : index
    %c0_11 = arith.constant 0 : index
    %c0_12 = arith.constant 0 : index
    %c0_13 = arith.constant 0 : index
    %6 = vector.load %arg8[%c0_10, %c0_11, %c0_12, %c0_13] : memref<2x4x8x32xf32, #tpu.memory_space<vmem>>, vector<1x4x8x32xf32>
    %7 = vector.shape_cast %6 : vector<1x4x8x32xf32> to vector<4x8x32xf32>
    %c0_14 = arith.constant 0 : index
    %c0_15 = arith.constant 0 : index
    %8 = vector.load %arg11[%c0_14, %c0_15] : memref<2x32xf32, #tpu.memory_space<vmem>>, vector<1x32xf32>
    %c0_16 = arith.constant 0 : index
    %c0_17 = arith.constant 0 : index
    %9 = vector.load %arg3[%c0_16, %c0_17] : memref<16x16xf32, #tpu.memory_space<vmem>>, vector<16x16xf32>
    %cst = arith.constant dense<0.000000e+00> : vector<16x32xf32>
    %10 = tpu.matmul %0, %1, %cst {dimension_numbers = #tpu.dot_dimension_numbers<[1], [0], [0], [1], [0, 0, 1, 1], [], []>} : vector<16x128xf32>, vector<128x32xf32>, vector<16x32xf32> -> vector<16x32xf32>
    %11 = vector.broadcast %2 : vector<1x32xf32> to vector<16x32xf32>
    %12 = arith.addf %10, %11 : vector<16x32xf32>
    %cst_18 = arith.constant dense<0.000000e+00> : vector<16x96xf32>
    %13 = tpu.matmul %12, %4, %cst_18 {dimension_numbers = #tpu.dot_dimension_numbers<[1], [0], [0], [1], [0, 0, 1, 1], [], []>} : vector<16x32xf32>, vector<32x96xf32>, vector<16x96xf32> -> vector<16x96xf32>
    %14 = vector.broadcast %5 : vector<1x96xf32> to vector<16x96xf32>
    %15 = arith.addf %13, %14 : vector<16x96xf32>
    %16 = vector.extract_strided_slice %15 {offsets = [0, 0], sizes = [16, 8], strides = [1, 1]} : vector<16x96xf32> to vector<16x8xf32>
    %17 = vector.extract_strided_slice %15 {offsets = [0, 8], sizes = [16, 8], strides = [1, 1]} : vector<16x96xf32> to vector<16x8xf32>
    %18 = vector.extract_strided_slice %15 {offsets = [0, 16], sizes = [16, 8], strides = [1, 1]} : vector<16x96xf32> to vector<16x8xf32>
    %19 = vector.extract_strided_slice %15 {offsets = [0, 24], sizes = [16, 8], strides = [1, 1]} : vector<16x96xf32> to vector<16x8xf32>
    %20 = vector.shape_cast %16 : vector<16x8xf32> to vector<1x16x8xf32>
    %21 = vector.shape_cast %17 : vector<16x8xf32> to vector<1x16x8xf32>
    %22 = vector.shape_cast %18 : vector<16x8xf32> to vector<1x16x8xf32>
    %23 = vector.shape_cast %19 : vector<16x8xf32> to vector<1x16x8xf32>
    %24 = tpu.concatenate %20, %21, %22, %23 in 0 : vector<1x16x8xf32>, vector<1x16x8xf32>, vector<1x16x8xf32>, vector<1x16x8xf32> -> vector<4x16x8xf32>
    %25 = vector.extract_strided_slice %15 {offsets = [0, 32], sizes = [16, 8], strides = [1, 1]} : vector<16x96xf32> to vector<16x8xf32>
    %26 = vector.extract_strided_slice %15 {offsets = [0, 40], sizes = [16, 8], strides = [1, 1]} : vector<16x96xf32> to vector<16x8xf32>
    %27 = vector.extract_strided_slice %15 {offsets = [0, 48], sizes = [16, 8], strides = [1, 1]} : vector<16x96xf32> to vector<16x8xf32>
    %28 = vector.extract_strided_slice %15 {offsets = [0, 56], sizes = [16, 8], strides = [1, 1]} : vector<16x96xf32> to vector<16x8xf32>
    %29 = vector.shape_cast %25 : vector<16x8xf32> to vector<1x16x8xf32>
    %30 = vector.shape_cast %26 : vector<16x8xf32> to vector<1x16x8xf32>
    %31 = vector.shape_cast %27 : vector<16x8xf32> to vector<1x16x8xf32>
    %32 = vector.shape_cast %28 : vector<16x8xf32> to vector<1x16x8xf32>
    %33 = tpu.concatenate %29, %30, %31, %32 in 0 : vector<1x16x8xf32>, vector<1x16x8xf32>, vector<1x16x8xf32>, vector<1x16x8xf32> -> vector<4x16x8xf32>
    %34 = vector.extract_strided_slice %15 {offsets = [0, 64], sizes = [16, 8], strides = [1, 1]} : vector<16x96xf32> to vector<16x8xf32>
    %35 = vector.extract_strided_slice %15 {offsets = [0, 72], sizes = [16, 8], strides = [1, 1]} : vector<16x96xf32> to vector<16x8xf32>
    %36 = vector.extract_strided_slice %15 {offsets = [0, 80], sizes = [16, 8], strides = [1, 1]} : vector<16x96xf32> to vector<16x8xf32>
    %37 = vector.extract_strided_slice %15 {offsets = [0, 88], sizes = [16, 8], strides = [1, 1]} : vector<16x96xf32> to vector<16x8xf32>
    %38 = vector.shape_cast %34 : vector<16x8xf32> to vector<1x16x8xf32>
    %39 = vector.shape_cast %35 : vector<16x8xf32> to vector<1x16x8xf32>
    %40 = vector.shape_cast %36 : vector<16x8xf32> to vector<1x16x8xf32>
    %41 = vector.shape_cast %37 : vector<16x8xf32> to vector<1x16x8xf32>
    %42 = tpu.concatenate %38, %39, %40, %41 in 0 : vector<1x16x8xf32>, vector<1x16x8xf32>, vector<1x16x8xf32>, vector<1x16x8xf32> -> vector<4x16x8xf32>
    "tpu.trace_start"() <{level = 10 : i32, message = "hqd,hkd->hqk"}> : () -> ()
    %cst_19 = arith.constant dense<0.000000e+00> : vector<4x16x16xf32>
    %43 = tpu.matmul %24, %33, %cst_19 {dimension_numbers = #tpu.dot_dimension_numbers<[2], [2], [1], [1], [0, 0, 0, 1, 1, 1], [0], [0]>} : vector<4x16x8xf32>, vector<4x16x8xf32>, vector<4x16x16xf32> -> vector<4x16x16xf32>
    "tpu.trace_stop"() : () -> ()
    %cst_20 = arith.constant 0.353553385 : f32
    %44 = vector.broadcast %cst_20 : f32 to vector<4x16x16xf32>
    %45 = arith.mulf %43, %44 : vector<4x16x16xf32>
    %46 = vector.shape_cast %9 : vector<16x16xf32> to vector<1x16x16xf32>
    %47 = vector.broadcast %46 : vector<1x16x16xf32> to vector<4x16x16xf32>
    %48 = arith.addf %45, %47 : vector<4x16x16xf32>
    %cst_21 = arith.constant dense<0xFF800000> : vector<4x16xf32>
    %49 = vector.multi_reduction <maximumf>, %48, %cst_21 [2] : vector<4x16x16xf32> to vector<4x16xf32>
    %50 = vector.shape_cast %49 : vector<4x16xf32> to vector<4x16x1xf32>
    %51 = vector.broadcast %50 : vector<4x16x1xf32> to vector<4x16x16xf32>
    %52 = arith.subf %48, %51 : vector<4x16x16xf32>
    %53 = math.exp %52 : vector<4x16x16xf32>
    %cst_22 = arith.constant dense<0.000000e+00> : vector<4x16xf32>
    %54 = vector.multi_reduction <add>, %53, %cst_22 [2] : vector<4x16x16xf32> to vector<4x16xf32>
    %55 = vector.shape_cast %54 : vector<4x16xf32> to vector<4x16x1xf32>
    %56 = tpu.reciprocal %55 : vector<4x16x1xf32> -> vector<4x16x1xf32>
    %57 = vector.broadcast %56 : vector<4x16x1xf32> to vector<4x16x16xf32>
    %58 = arith.mulf %53, %57 : vector<4x16x16xf32>
    "tpu.trace_start"() <{level = 10 : i32, message = "hqk,hkd->hqd"}> : () -> ()
    %cst_23 = arith.constant dense<0.000000e+00> : vector<4x16x8xf32>
    %59 = tpu.matmul %58, %42, %cst_23 {dimension_numbers = #tpu.dot_dimension_numbers<[2], [1], [1], [2], [0, 0, 0, 1, 1, 2], [0], [0]>} : vector<4x16x16xf32>, vector<4x16x8xf32>, vector<4x16x8xf32> -> vector<4x16x8xf32>
    "tpu.trace_stop"() : () -> ()
    "tpu.trace_start"() <{level = 10 : i32, message = "hsd,hde->hse"}> : () -> ()
    %cst_24 = arith.constant dense<0.000000e+00> : vector<4x16x32xf32>
    %60 = tpu.matmul %59, %7, %cst_24 {dimension_numbers = #tpu.dot_dimension_numbers<[2], [1], [1], [2], [0, 0, 0, 1, 1, 2], [0], [0]>} : vector<4x16x8xf32>, vector<4x8x32xf32>, vector<4x16x32xf32> -> vector<4x16x32xf32>
    "tpu.trace_stop"() : () -> ()
    %cst_25 = arith.constant dense<0.000000e+00> : vector<16x32xf32>
    %61 = vector.multi_reduction <add>, %60, %cst_25 [0] : vector<4x16x32xf32> to vector<16x32xf32>
    %62 = vector.broadcast %8 : vector<1x32xf32> to vector<16x32xf32>
    %63 = arith.addf %61, %62 : vector<16x32xf32>
    %c0_26 = arith.constant 0 : index
    %c0_27 = arith.constant 0 : index
    %64 = vector.load %arg2[%c0_26, %c0_27] : memref<8x256xf32, #tpu.memory_space<vmem>>, vector<8x256xf32>
    %c0_28 = arith.constant 0 : index
    %c0_29 = arith.constant 0 : index
    %65 = vector.load %arg6[%c0_28, %c0_29] : memref<256x32xf32, #tpu.memory_space<vmem>>, vector<256x32xf32>
    %c1 = arith.constant 1 : index
    %c0_30 = arith.constant 0 : index
    %66 = vector.load %arg9[%c1, %c0_30] : memref<2x32xf32, #tpu.memory_space<vmem>>, vector<1x32xf32>
    %c1_31 = arith.constant 1 : index
    %c0_32 = arith.constant 0 : index
    %c0_33 = arith.constant 0 : index
    %67 = vector.load %arg7[%c1_31, %c0_32, %c0_33] : memref<2x32x96xf32, #tpu.memory_space<vmem>>, vector<1x32x96xf32>
    %68 = vector.shape_cast %67 : vector<1x32x96xf32> to vector<32x96xf32>
    %c1_34 = arith.constant 1 : index
    %c0_35 = arith.constant 0 : index
    %69 = vector.load %arg10[%c1_34, %c0_35] : memref<2x96xf32, #tpu.memory_space<vmem>>, vector<1x96xf32>
    %c1_36 = arith.constant 1 : index
    %c0_37 = arith.constant 0 : index
    %c0_38 = arith.constant 0 : index
    %c0_39 = arith.constant 0 : index
    %70 = vector.load %arg8[%c1_36, %c0_37, %c0_38, %c0_39] : memref<2x4x8x32xf32, #tpu.memory_space<vmem>>, vector<1x4x8x32xf32>
    %71 = vector.shape_cast %70 : vector<1x4x8x32xf32> to vector<4x8x32xf32>
    %c1_40 = arith.constant 1 : index
    %c0_41 = arith.constant 0 : index
    %72 = vector.load %arg11[%c1_40, %c0_41] : memref<2x32xf32, #tpu.memory_space<vmem>>, vector<1x32xf32>
    %c0_42 = arith.constant 0 : index
    %c0_43 = arith.constant 0 : index
    %73 = vector.load %arg4[%c0_42, %c0_43] : memref<8x8xf32, #tpu.memory_space<vmem>>, vector<8x8xf32>
    %cst_44 = arith.constant dense<0.000000e+00> : vector<8x32xf32>
    %74 = tpu.matmul %64, %65, %cst_44 {dimension_numbers = #tpu.dot_dimension_numbers<[1], [0], [0], [1], [0, 0, 1, 1], [], []>} : vector<8x256xf32>, vector<256x32xf32>, vector<8x32xf32> -> vector<8x32xf32>
    %75 = vector.broadcast %66 : vector<1x32xf32> to vector<8x32xf32>
    %76 = arith.addf %74, %75 : vector<8x32xf32>
    %cst_45 = arith.constant dense<0.000000e+00> : vector<8x96xf32>
    %77 = tpu.matmul %76, %68, %cst_45 {dimension_numbers = #tpu.dot_dimension_numbers<[1], [0], [0], [1], [0, 0, 1, 1], [], []>} : vector<8x32xf32>, vector<32x96xf32>, vector<8x96xf32> -> vector<8x96xf32>
    %78 = vector.broadcast %69 : vector<1x96xf32> to vector<8x96xf32>
    %79 = arith.addf %77, %78 : vector<8x96xf32>
    %80 = vector.extract_strided_slice %79 {offsets = [0, 0], sizes = [8, 8], strides = [1, 1]} : vector<8x96xf32> to vector<8x8xf32>
    %81 = vector.extract_strided_slice %79 {offsets = [0, 8], sizes = [8, 8], strides = [1, 1]} : vector<8x96xf32> to vector<8x8xf32>
    %82 = vector.extract_strided_slice %79 {offsets = [0, 16], sizes = [8, 8], strides = [1, 1]} : vector<8x96xf32> to vector<8x8xf32>
    %83 = vector.extract_strided_slice %79 {offsets = [0, 24], sizes = [8, 8], strides = [1, 1]} : vector<8x96xf32> to vector<8x8xf32>
    %84 = vector.shape_cast %80 : vector<8x8xf32> to vector<1x8x8xf32>
    %85 = vector.shape_cast %81 : vector<8x8xf32> to vector<1x8x8xf32>
    %86 = vector.shape_cast %82 : vector<8x8xf32> to vector<1x8x8xf32>
    %87 = vector.shape_cast %83 : vector<8x8xf32> to vector<1x8x8xf32>
    %88 = tpu.concatenate %84, %85, %86, %87 in 0 : vector<1x8x8xf32>, vector<1x8x8xf32>, vector<1x8x8xf32>, vector<1x8x8xf32> -> vector<4x8x8xf32>
    %89 = vector.extract_strided_slice %79 {offsets = [0, 32], sizes = [8, 8], strides = [1, 1]} : vector<8x96xf32> to vector<8x8xf32>
    %90 = vector.extract_strided_slice %79 {offsets = [0, 40], sizes = [8, 8], strides = [1, 1]} : vector<8x96xf32> to vector<8x8xf32>
    %91 = vector.extract_strided_slice %79 {offsets = [0, 48], sizes = [8, 8], strides = [1, 1]} : vector<8x96xf32> to vector<8x8xf32>
    %92 = vector.extract_strided_slice %79 {offsets = [0, 56], sizes = [8, 8], strides = [1, 1]} : vector<8x96xf32> to vector<8x8xf32>
    %93 = vector.shape_cast %89 : vector<8x8xf32> to vector<1x8x8xf32>
    %94 = vector.shape_cast %90 : vector<8x8xf32> to vector<1x8x8xf32>
    %95 = vector.shape_cast %91 : vector<8x8xf32> to vector<1x8x8xf32>
    %96 = vector.shape_cast %92 : vector<8x8xf32> to vector<1x8x8xf32>
    %97 = tpu.concatenate %93, %94, %95, %96 in 0 : vector<1x8x8xf32>, vector<1x8x8xf32>, vector<1x8x8xf32>, vector<1x8x8xf32> -> vector<4x8x8xf32>
    %98 = vector.extract_strided_slice %79 {offsets = [0, 64], sizes = [8, 8], strides = [1, 1]} : vector<8x96xf32> to vector<8x8xf32>
    %99 = vector.extract_strided_slice %79 {offsets = [0, 72], sizes = [8, 8], strides = [1, 1]} : vector<8x96xf32> to vector<8x8xf32>
    %100 = vector.extract_strided_slice %79 {offsets = [0, 80], sizes = [8, 8], strides = [1, 1]} : vector<8x96xf32> to vector<8x8xf32>
    %101 = vector.extract_strided_slice %79 {offsets = [0, 88], sizes = [8, 8], strides = [1, 1]} : vector<8x96xf32> to vector<8x8xf32>
    %102 = vector.shape_cast %98 : vector<8x8xf32> to vector<1x8x8xf32>
    %103 = vector.shape_cast %99 : vector<8x8xf32> to vector<1x8x8xf32>
    %104 = vector.shape_cast %100 : vector<8x8xf32> to vector<1x8x8xf32>
    %105 = vector.shape_cast %101 : vector<8x8xf32> to vector<1x8x8xf32>
    %106 = tpu.concatenate %102, %103, %104, %105 in 0 : vector<1x8x8xf32>, vector<1x8x8xf32>, vector<1x8x8xf32>, vector<1x8x8xf32> -> vector<4x8x8xf32>
    "tpu.trace_start"() <{level = 10 : i32, message = "hqd,hkd->hqk"}> : () -> ()
    %cst_46 = arith.constant dense<0.000000e+00> : vector<4x8x8xf32>
    %107 = tpu.matmul %88, %97, %cst_46 {dimension_numbers = #tpu.dot_dimension_numbers<[2], [2], [1], [1], [0, 0, 0, 1, 1, 1], [0], [0]>} : vector<4x8x8xf32>, vector<4x8x8xf32>, vector<4x8x8xf32> -> vector<4x8x8xf32>
    "tpu.trace_stop"() : () -> ()
    %cst_47 = arith.constant 0.353553385 : f32
    %108 = vector.broadcast %cst_47 : f32 to vector<4x8x8xf32>
    %109 = arith.mulf %107, %108 : vector<4x8x8xf32>
    %110 = vector.shape_cast %73 : vector<8x8xf32> to vector<1x8x8xf32>
    %111 = vector.broadcast %110 : vector<1x8x8xf32> to vector<4x8x8xf32>
    %112 = arith.addf %109, %111 : vector<4x8x8xf32>
    %cst_48 = arith.constant dense<0xFF800000> : vector<4x8xf32>
    %113 = vector.multi_reduction <maximumf>, %112, %cst_48 [2] : vector<4x8x8xf32> to vector<4x8xf32>
    %114 = vector.shape_cast %113 : vector<4x8xf32> to vector<4x8x1xf32>
    %115 = vector.broadcast %114 : vector<4x8x1xf32> to vector<4x8x8xf32>
    %116 = arith.subf %112, %115 : vector<4x8x8xf32>
    %117 = math.exp %116 : vector<4x8x8xf32>
    %cst_49 = arith.constant dense<0.000000e+00> : vector<4x8xf32>
    %118 = vector.multi_reduction <add>, %117, %cst_49 [2] : vector<4x8x8xf32> to vector<4x8xf32>
    %119 = vector.shape_cast %118 : vector<4x8xf32> to vector<4x8x1xf32>
    %120 = tpu.reciprocal %119 : vector<4x8x1xf32> -> vector<4x8x1xf32>
    %121 = vector.broadcast %120 : vector<4x8x1xf32> to vector<4x8x8xf32>
    %122 = arith.mulf %117, %121 : vector<4x8x8xf32>
    "tpu.trace_start"() <{level = 10 : i32, message = "hqk,hkd->hqd"}> : () -> ()
    %cst_50 = arith.constant dense<0.000000e+00> : vector<4x8x8xf32>
    %123 = tpu.matmul %122, %106, %cst_50 {dimension_numbers = #tpu.dot_dimension_numbers<[2], [1], [1], [2], [0, 0, 0, 1, 1, 2], [0], [0]>} : vector<4x8x8xf32>, vector<4x8x8xf32>, vector<4x8x8xf32> -> vector<4x8x8xf32>
    "tpu.trace_stop"() : () -> ()
    "tpu.trace_start"() <{level = 10 : i32, message = "hsd,hde->hse"}> : () -> ()
    %cst_51 = arith.constant dense<0.000000e+00> : vector<4x8x32xf32>
    %124 = tpu.matmul %123, %71, %cst_51 {dimension_numbers = #tpu.dot_dimension_numbers<[2], [1], [1], [2], [0, 0, 0, 1, 1, 2], [0], [0]>} : vector<4x8x8xf32>, vector<4x8x32xf32>, vector<4x8x32xf32> -> vector<4x8x32xf32>
    "tpu.trace_stop"() : () -> ()
    %cst_52 = arith.constant dense<0.000000e+00> : vector<8x32xf32>
    %125 = vector.multi_reduction <add>, %124, %cst_52 [0] : vector<4x8x32xf32> to vector<8x32xf32>
    %126 = vector.broadcast %72 : vector<1x32xf32> to vector<8x32xf32>
    %127 = arith.addf %125, %126 : vector<8x32xf32>
    %128 = vector.extract_strided_slice %63 {offsets = [0, 0], sizes = [8, 32], strides = [1, 1]} : vector<16x32xf32> to vector<8x32xf32>
    %129 = vector.extract_strided_slice %127 {offsets = [0, 0], sizes = [1, 32], strides = [1, 1]} : vector<8x32xf32> to vector<1x32xf32>
    %130 = vector.broadcast %129 : vector<1x32xf32> to vector<8x32xf32>
    %131 = arith.addf %128, %130 : vector<8x32xf32>
    %132 = vector.extract_strided_slice %127 {offsets = [1, 0], sizes = [1, 32], strides = [1, 1]} : vector<8x32xf32> to vector<1x32xf32>
    %133 = vector.broadcast %132 : vector<1x32xf32> to vector<8x32xf32>
    %134 = arith.addf %128, %133 : vector<8x32xf32>
    %135 = vector.extract_strided_slice %127 {offsets = [2, 0], sizes = [1, 32], strides = [1, 1]} : vector<8x32xf32> to vector<1x32xf32>
    %136 = vector.broadcast %135 : vector<1x32xf32> to vector<8x32xf32>
    %137 = arith.addf %128, %136 : vector<8x32xf32>
    %138 = vector.extract_strided_slice %127 {offsets = [3, 0], sizes = [1, 32], strides = [1, 1]} : vector<8x32xf32> to vector<1x32xf32>
    %139 = vector.broadcast %138 : vector<1x32xf32> to vector<8x32xf32>
    %140 = arith.addf %128, %139 : vector<8x32xf32>
    %141 = tpu.concatenate %131, %134, %137, %140 in 1 : vector<8x32xf32>, vector<8x32xf32>, vector<8x32xf32>, vector<8x32xf32> -> vector<8x128xf32>
    %c0_53 = arith.constant 0 : index
    %c0_54 = arith.constant 0 : index
    %142 = vector.load %arg12[%c0_53, %c0_54] : memref<16x128xf32, #tpu.memory_space<vmem>>, vector<8x128xf32>
    tpu.vector_store %arg12[%c0_53, %c0_54], %141 {strides = array<i32>} : memref<16x128xf32, #tpu.memory_space<vmem>>, vector<8x128xf32>,
    %143 = vector.extract_strided_slice %63 {offsets = [8, 0], sizes = [8, 32], strides = [1, 1]} : vector<16x32xf32> to vector<8x32xf32>
    %144 = vector.extract_strided_slice %127 {offsets = [4, 0], sizes = [1, 32], strides = [1, 1]} : vector<8x32xf32> to vector<1x32xf32>
    %145 = vector.broadcast %144 : vector<1x32xf32> to vector<8x32xf32>
    %146 = arith.addf %143, %145 : vector<8x32xf32>
    %147 = vector.extract_strided_slice %127 {offsets = [5, 0], sizes = [1, 32], strides = [1, 1]} : vector<8x32xf32> to vector<1x32xf32>
    %148 = vector.broadcast %147 : vector<1x32xf32> to vector<8x32xf32>
    %149 = arith.addf %143, %148 : vector<8x32xf32>
    %150 = vector.extract_strided_slice %127 {offsets = [6, 0], sizes = [1, 32], strides = [1, 1]} : vector<8x32xf32> to vector<1x32xf32>
    %151 = vector.broadcast %150 : vector<1x32xf32> to vector<8x32xf32>
    %152 = arith.addf %143, %151 : vector<8x32xf32>
    %153 = vector.extract_strided_slice %127 {offsets = [7, 0], sizes = [1, 32], strides = [1, 1]} : vector<8x32xf32> to vector<1x32xf32>
    %154 = vector.broadcast %153 : vector<1x32xf32> to vector<8x32xf32>
    %155 = arith.addf %143, %154 : vector<8x32xf32>
    %156 = tpu.concatenate %146, %149, %152, %155 in 1 : vector<8x32xf32>, vector<8x32xf32>, vector<8x32xf32>, vector<8x32xf32> -> vector<8x128xf32>
    %c8 = arith.constant 8 : index
    %c0_55 = arith.constant 0 : index
    %157 = vector.load %arg12[%c8, %c0_55] : memref<16x128xf32, #tpu.memory_space<vmem>>, vector<8x128xf32>
    tpu.vector_store %arg12[%c8, %c0_55], %156 {strides = array<i32>} : memref<16x128xf32, #tpu.memory_space<vmem>>, vector<8x128xf32>,
    return
  }
  func.func @transform_0(%arg0: i32) -> (i32, i32) {
    %c0_i32 = arith.constant 0 : i32
    %c0_i32_0 = arith.constant 0 : i32
    return %arg0, %c0_i32 : i32, i32
  }
  func.func @transform_1(%arg0: i32) -> (i32, i32) {
    %c0_i32 = arith.constant 0 : i32
    %c0_i32_0 = arith.constant 0 : i32
    return %arg0, %c0_i32 : i32, i32
  }
  func.func @transform_2(%arg0: i32) -> (i32, i32) {
    %c0_i32 = arith.constant 0 : i32
    %c0_i32_0 = arith.constant 0 : i32
    %c0_i32_1 = arith.constant 0 : i32
    return %c0_i32, %c0_i32_0 : i32, i32
  }
  func.func @transform_3(%arg0: i32) -> (i32, i32) {
    %c0_i32 = arith.constant 0 : i32
    %c0_i32_0 = arith.constant 0 : i32
    %c0_i32_1 = arith.constant 0 : i32
    return %c0_i32, %c0_i32_0 : i32, i32
  }
  func.func @transform_4(%arg0: i32) -> (i32, i32) {
    %c0_i32 = arith.constant 0 : i32
    %c0_i32_0 = arith.constant 0 : i32
    %c0_i32_1 = arith.constant 0 : i32
    return %c0_i32, %c0_i32_0 : i32, i32
  }
  func.func @transform_5(%arg0: i32) -> (i32, i32) {
    %c0_i32 = arith.constant 0 : i32
    %c0_i32_0 = arith.constant 0 : i32
    %c0_i32_1 = arith.constant 0 : i32
    return %c0_i32, %c0_i32_0 : i32, i32
  }
  func.func @transform_6(%arg0: i32) -> (i32, i32, i32) {
    %c0_i32 = arith.constant 0 : i32
    %c0_i32_0 = arith.constant 0 : i32
    %c0_i32_1 = arith.constant 0 : i32
    %c0_i32_2 = arith.constant 0 : i32
    return %c0_i32, %c0_i32_0, %c0_i32_1 : i32, i32, i32
  }
  func.func @transform_7(%arg0: i32) -> (i32, i32, i32, i32) {
    %c0_i32 = arith.constant 0 : i32
    %c0_i32_0 = arith.constant 0 : i32
    %c0_i32_1 = arith.constant 0 : i32
    %c0_i32_2 = arith.constant 0 : i32
    %c0_i32_3 = arith.constant 0 : i32
    return %c0_i32, %c0_i32_0, %c0_i32_1, %c0_i32_2 : i32, i32, i32, i32
  }
  func.func @transform_8(%arg0: i32) -> (i32, i32) {
    %c0_i32 = arith.constant 0 : i32
    %c0_i32_0 = arith.constant 0 : i32
    %c0_i32_1 = arith.constant 0 : i32
    return %c0_i32, %c0_i32_0 : i32, i32
  }
  func.func @transform_9(%arg0: i32) -> (i32, i32) {
    %c0_i32 = arith.constant 0 : i32
    %c0_i32_0 = arith.constant 0 : i32
    %c0_i32_1 = arith.constant 0 : i32
    return %c0_i32, %c0_i32_0 : i32, i32
  }
  func.func @transform_10(%arg0: i32) -> (i32, i32) {
    %c0_i32 = arith.constant 0 : i32
    %c0_i32_0 = arith.constant 0 : i32
    %c0_i32_1 = arith.constant 0 : i32
    return %c0_i32, %c0_i32_0 : i32, i32
  }
  func.func @transform_11(%arg0: i32) -> (i32, i32) {
    %c0_i32 = arith.constant 0 : i32
    %c0_i32_0 = arith.constant 0 : i32
    return %arg0, %c0_i32 : i32, i32
  }
}

</mosaic_0001>

<bundles_post_ra>
// kernel: dual_branch_attention.1
= control target key start
LH: loop header
LB: loop body
LE: loop exit
PB: predicated region body
PF: predicated region fallthrough
CT: control target
= control target key end

     0   :  { %vm152_vm0 = vcmask 261120   ;;  %vm252_vm1 = vcmask 64512   ;;  %s3247_s25 = smov 112   ;;  %s3248_s26 = smov 120   ;;  %vm613_vm3 = vcmask 130048   ;;  %vm3253_vm4 = vmmov 0   ;;  %s3771_s4 = inlined_call_operand.vmem [shape: f32[128,32], index: 4, kind: input, shape index: {}]   ;;  %s3772_s0 = inlined_call_operand.vmem [shape: f32[16,128], index: 0, kind: input, shape index: {}]   ;;  %s3773_s6 = inlined_call_operand.vmem [shape: f32[2,32,96], index: 6, kind: input, shape index: {}]   ;;  %s3774_s8 = inlined_call_operand.vmem [shape: f32[2,32], index: 8, kind: input, shape index: {}]   ;;  %s3775_s9 = inlined_call_operand.vmem [shape: f32[2,96], index: 9, kind: input, shape index: {}]   ;;  %s3776_s2 = inlined_call_operand.vmem [shape: f32[16,16], index: 2, kind: input, shape index: {}]   ;;  %s3777_s7 = inlined_call_operand.vmem [shape: f32[2,4,8,32], index: 7, kind: input, shape index: {}]   ;;  %s3778_s5 = inlined_call_operand.vmem [shape: f32[256,32], index: 5, kind: input, shape index: {}]   ;;  %s3779_s1 = inlined_call_operand.vmem [shape: f32[8,256], index: 1, kind: input, shape index: {}]   ;;  %s3780_s3 = inlined_call_operand.vmem [shape: f32[8,8], index: 3, kind: input, shape index: {}]   ;;  %s3781_s10 = inlined_call_operand.vmem [shape: f32[2,32], index: 10, kind: input, shape index: {}]   ;;  %s3782_s11 = inlined_call_operand.vmem [shape: f32[16,128], index: 11, kind: output, shape index: {}]  }
   0x1   :  { %v40_v0 = vld [vmem:[%s3771_s4] sm:$0xff]  ;;  %v41_v1 = vld [vmem:[%s3771_s4 + $0x8] sm:$0xff]  ;;  %v42_v2 = vld [vmem:[%s3771_s4 + $0x10] sm:$0xff]  ;;  %s3249_s27 = smov 96   ;;  %s3250_s28 = smov 104   ;;  %vm2597_vm5 = vcmask 523264  }
   0x2   :  { %v3032_v3 = vpack.c.bf16 %v41_v1, %v40_v0  ;;  %v43_v4 = vld [vmem:[%s3771_s4 + $0x18] sm:$0xff]  ;;  %v44_v6 = vld [vmem:[%s3771_s4 + $0x20] sm:$0xff]  ;;  %v45_v7 = vld [vmem:[%s3771_s4 + $0x28] sm:$0xff]  ;;  %vm2599_vm6 = vcmask 785408  }
   0x3   :  { %v3036_v5 = vpack.c.bf16 %v43_v4, %v42_v2  ;;  %v3040_v8 = vpack.c.bf16 %v45_v7, %v44_v6  ;;  %v46_v9 = vld [vmem:[%s3771_s4 + $0x30] sm:$0xff]  ;;  %v38_v10 = vld [vmem:[%s3772_s0] sm:$0xff]  ;;  %v47_v11 = vld [vmem:[%s3771_s4 + $0x38] sm:$0xff] }
   0x4   :  { %3033 = vmatprep.subr.bf16.mxu0 %v3032_v3  ;;  %2871 = vmatprep.mubr.f32.mxu0 %v38_v10  ;;  %v57_v12 = vld [vmem:[%s3773_s6] sm:$0xff]  ;;  %v58_v13 = vld [vmem:[%s3773_s6 + $0x8] sm:$0xff]  ;;  %v3044_v15 = vpack.c.bf16 %v47_v11, %v46_v9  ;;  %v50_v19 = vld [vmem:[%s3771_s4 + $0x50] sm:$0xff] }
   0x5   :  { %3035 = vmatpush3.bf16.msra.mxu0 %v3032_v3  ;;  %v3064_v14 = vpack.c.bf16 %v58_v13, %v57_v12  ;;  %v48_v16 = vld [vmem:[%s3771_s4 + $0x40] sm:$0xff]  ;;  %v49_v17 = vld [vmem:[%s3771_s4 + $0x48] sm:$0xff]  ;;  %v51_v20 = vld [vmem:[%s3771_s4 + $0x58] sm:$0xff] }
   0x6   :  { %3037 = vmatprep.subr.bf16.mxu0 %v3036_v5  ;;  %v3048_v18 = vpack.c.bf16 %v49_v17, %v48_v16  ;;  %v3052_v21 = vpack.c.bf16 %v51_v20, %v50_v19  ;;  %v52_v22 = vld [vmem:[%s3771_s4 + $0x60] sm:$0xff]  ;;  %v53_v23 = vld [vmem:[%s3771_s4 + $0x68] sm:$0xff]  ;;  %v54_v25 = vld [vmem:[%s3771_s4 + $0x70] sm:$0xff] }
   0x7   :  { %3065 = vmatprep.subr.bf16.mxu1 %v3064_v14  ;;  %v3056_v24 = vpack.c.bf16 %v53_v23, %v52_v22  ;;  %v55_v26 = vld [vmem:[%s3771_s4 + $0x78] sm:$0xff]  ;;  %v39_v28 = vld [vmem:[%s3772_s0 + $0x8] sm:$0xff]  ;;  %v59_v29 = vld [vmem:[%s3773_s6 + $0x10] sm:$0xff] }
   0x8   :  { %3067 = vmatpush3.bf16.msra.mxu1 %v3064_v14  ;;  %v3060_v27 = vpack.c.bf16 %v55_v26, %v54_v25  ;;  %v60_v30 = vld [vmem:[%s3773_s6 + $0x18] sm:$0xff]  ;;  %v2642_v32 = vld [vmem:[%s3774_s8] ss:$0 sm:$0xff]  ;;  %vm3409_vm2 = vmpackc.low %vm252_vm1, %vm252_vm1 }
   0x9   :  { %3039 = vmatpush3.bf16.msra.mxu0 %v3036_v5  ;;  %v3068_v31 = vpack.c.bf16 %v60_v30, %v59_v29  ;;  %v2643_v37 = vld [vmem:[%s3775_s9] ss:$0 sm:$0xff]  ;;  %v3440_v2 = vld [vmem:[%s3776_s2 + $0x8] sm:$0xff] }
   0xa   :  { %3041 = vmatprep.subr.bf16.mxu0 %v3040_v8  ;;  %v3445_v5 = vld [vmem:[%s3776_s2] sm:$0xff]  ;;  %s3251_s2 = smov 64  }
   0xb   :  { %3069 = vmatprep.subr.bf16.mxu1 %v3068_v31 }
   0xc   :  { %3071 = vmatpush3.bf16.msra.mxu1 %v3068_v31 }
   0xd   :  { %3043 = vmatpush3.bf16.msra.mxu0 %v3040_v8 }
   0xe   :  { %3045 = vmatprep.subr.bf16.mxu0 %v3044_v15 }
  0x11   :  { %3047 = vmatpush3.bf16.msra.mxu0 %v3044_v15 }
  0x12   :  { %3049 = vmatprep.subr.bf16.mxu0 %v3048_v18 }
  0x15   :  { %3051 = vmatpush3.bf16.msra.mxu0 %v3048_v18 }
  0x16   :  { %3053 = vmatprep.subr.bf16.mxu0 %v3052_v21 }
  0x19   :  { %3055 = vmatpush3.bf16.msra.mxu0 %v3052_v21 }
  0x1a   :  { %3057 = vmatprep.subr.bf16.mxu0 %v3056_v24 }
  0x1d   :  { %3059 = vmatpush3.bf16.msra.mxu0 %v3056_v24 }
  0x1e   :  { %3061 = vmatprep.subr.bf16.mxu0 %v3060_v27 }
  0x21   :  { %3063 = vmatpush3.bf16.msra.mxu0 %v3060_v27 }
  0x24   :  { %2872 = vmatmul.mubr.f32.vlgmr.msra.gmra.mrb[0].mxu0 %v39_v28 }
  0xf7   :  { %v2873_v33 = vpop.f32.mrb[0].mxu0 }
  0xf8   :  { %v139_v34 = vpop.f32.mrb[1].mxu0  ;;  %v145_v36 = vadd.f32 %v2873_v33, %v2642_v32 }
  0xf9   :  { %v140_v35 = vadd.f32 %v2642_v32, %v139_v34 }
  0xfb   :  { %2882 = vmatprep.mubr.msk.f32.mxu1 %vm152_vm0, %v140_v35 }
  0xfc   :  { %2883 = vmatmul.mubr.msk.f32.vlgmr.msra.gmra.mrb[0].mxu1 %vm152_vm0, %v145_v36 }
 0x1cf   :  { %v2884_v38 = vpop.f32.mrb[0].mxu1 }
 0x1d0   :  { %v225_v39 = vpop.f32.mrb[1].mxu1  ;;  %v231_v41 = vadd.f32 %v2884_v38, %v2643_v37 }
 0x1d1   :  { %v226_v40 = vadd.f32 %v2643_v37, %v225_v39 }
 0x1d3   :  { %240 = vrot.lane.b32.xlu1 %v226_v40, %s3247_s25  ;;  %236 = vrot.lane.b32.xlu0 %v226_v40, %s3248_s26  ;;  %v3395_v42 = vpack.i.bf16 %v231_v41, %v226_v40 }
 0x1d4   :  { %2889 = vmatprep.mubr.msk.f32.mxu1 %vm252_vm1, %v226_v40 }
 0x1d7   :  { %242 = vrot.lane.b32.xlu1 %v231_v41, %s3247_s25  ;;  %238 = vrot.lane.b32.xlu0 %v231_v41, %s3248_s26 }
 0x1db   :  { %3160 = vrot.lane.b32.xlu0 %v3395_v42, %s3249_s27 }
 0x245   :  { %v241_v43 = vpop.permute.xlu1 %240  ;;  %v237_v44 = vpop.permute.xlu0 %236 }
 0x249   :  { %v243_v45 = vpop.permute.xlu1 %242  ;;  %v239_v46 = vpop.permute.xlu0 %238 }
 0x24a   :  { %v3399_v47 = vpack.i.bf16 %v243_v45, %v241_v43  ;;  %v3401_v48 = vpack.i.bf16 %v239_v46, %v237_v44 }
 0x24c   :  { %3170 = vrot.lane.b32.xlu0 %v3399_v47, %s3249_s27  ;;  %3165 = vrot.lane.b32.xlu1 %v3401_v48, %s3249_s27 }
 0x24d   :  { %v3161_v49 = vpop.permute.xlu0 %3160 }
 0x24e   :  { %v3163_v50 = vunpack.i.h.bf16 %v3161_v49  ;;  %v3162_v51 = vunpack.i.l.bf16 %v3161_v49 }
 0x250   :  { %v3072_v53 = vpack.c.bf16 %v3163_v50, %v3162_v51  ;;  %246 = vrot.lane.b32.xlu0 %v231_v41, %s3250_s28  ;;  %244 = vrot.lane.b32.xlu1 %v226_v40, %s3250_s28 }
 0x252   :  { %3074 = vmatprep.subr.msk.bf16.mxu1 %vm3409_vm2, %v3072_v53 }
 0x253   :  { %3077 = vmatpush3.bf16.xpose.msk.msra.mxu1 %vm3409_vm2, %v3072_v53 }
 0x25a   :  { %2890 = vmatmul.mubr.msk.f32.vlgmr.msra.gmra.mrb[2].mxu1 %vm252_vm1, %v231_v41 }
 0x25b   :  { %2896 = vmatprep.mubr.msk.f32.mxu1 %vm252_vm1, %v237_v44 }
 0x2be   :  { %v3166_v54 = vpop.permute.xlu1 %3165  ;;  %v3171_v55 = vpop.permute.xlu0 %3170 }
 0x2bf   :  { %v3168_v56 = vunpack.i.h.bf16 %v3166_v54  ;;  %v3167_v57 = vunpack.i.l.bf16 %v3166_v54  ;;  %v3173_v58 = vunpack.i.h.bf16 %v3171_v55  ;;  %v3172_v59 = vunpack.i.l.bf16 %v3171_v55 }
 0x2c1   :  { %v3078_v60 = vpack.c.bf16 %v3168_v56, %v3167_v57  ;;  %v3084_v63 = vpack.c.bf16 %v3173_v58, %v3172_v59 }
 0x2c2   :  { %v245_v61 = vpop.permute.xlu1 %244  ;;  %v247_v62 = vpop.permute.xlu0 %246 }
 0x2c3   :  { %v3421_v0 = vpack.i.bf16 %v247_v62, %v245_v61  ;;  %3080 = vmatprep.subr.msk.bf16.mxu1 %vm3409_vm2, %v3078_v60  ;;  %2910 = vmatprep.mubr.msk.f32.mxu0 %vm252_vm1, %v245_v61 }
 0x2c4   :  { %3083 = vmatpush3.bf16.xpose.msk.msra.mxu1 %vm3409_vm2, %v3078_v60 }
 0x2c5   :  { %3175 = vrot.lane.b32.xlu1 %v3421_v0, %s3249_s27  ;;  %3086 = vmatprep.subr.msk.bf16.mxu1 %vm3409_vm2, %v3084_v63 }
 0x2cb   :  { %2897 = vmatmul.mubr.msk.f32.vlgmr.msra.gmra.mrb[4].mxu1 %vm252_vm1, %v239_v46 }
 0x2cc   :  { %3089 = vmatpush3.bf16.xpose.msk.msra.mxu1 %vm3409_vm2, %v3084_v63  ;;  %2903 = vmatprep.mubr.msk.f32.mxu1 %vm252_vm1, %v241_v43 }
 0x2d3   :  { %2904 = vmatmul.mubr.msk.f32.vlgmr.msra.gmra.mrb[6].mxu1 %vm252_vm1, %v243_v45 }
 0x32d   :  { %v2891_v1 = vpop.f32.mrb[2].mxu1 }
 0x32e   :  { %v598_v3 = vmul.f32 0.35355338, %v2891_v1  ;;  %v327_v4 = vpop.f32.mrb[3].mxu1 }
 0x32f   :  { %v597_v6 = vmul.f32 0.35355338, %v327_v4 }
 0x330   :  { %v606_v7 = vadd.f32 %v598_v3, %v3440_v2 }
 0x331   :  { %v605_v8 = vadd.f32 %v597_v6, %v3445_v5 }
 0x332   :  { %v617_v9 = vsel %vm613_vm3, %v606_v7, -inf }
 0x333   :  { %618 = vmax.xlane.f32.xlu1 %v617_v9  ;;  %v614_v10 = vsel %vm613_vm3, %v605_v8, -inf }
 0x334   :  { %615 = vmax.xlane.f32.xlu0 %v614_v10 }
 0x337   :  { %v3176_v11 = vpop.permute.xlu1 %3175 }
 0x338   :  { %v3178_v12 = vunpack.i.h.bf16 %v3176_v11  ;;  %v3177_v13 = vunpack.i.l.bf16 %v3176_v11 }
 0x33a   :  { %v3090_v14 = vpack.c.bf16 %v3178_v12, %v3177_v13 }
 0x33c   :  { %3092 = vmatprep.subr.msk.bf16.mxu0 %vm3409_vm2, %v3090_v14 }
 0x33d   :  { %3095 = vmatpush3.bf16.xpose.msk.msra.mxu0 %vm3409_vm2, %v3090_v14 }
 0x344   :  { %2911 = vmatmul.mubr.msk.f32.vlgmr.msra.gmra.mrb[2].mxu0 %vm252_vm1, %v247_v62 }
 0x39e   :  { %v2898_v15 = vpop.f32.mrb[4].mxu1 }
 0x39f   :  { %v414_v16 = vpop.f32.mrb[5].mxu1  ;;  %v600_v54 = vmul.f32 0.35355338, %v2898_v15 }
 0x3a0   :  { %v599_v53 = vmul.f32 0.35355338, %v414_v16 }
 0x3a2   :  { %v607_v56 = vadd.f32 %v599_v53, %v3445_v5 }
 0x3a4   :  { %v620_v58 = vsel %vm613_vm3, %v607_v56, -inf }
 0x3a6   :  { %v2905_v17 = vpop.f32.mrb[6].mxu1 }
 0x3a7   :  { %v501_v18 = vpop.f32.mrb[7].mxu1  ;;  %v602_v19 = vmul.f32 0.35355338, %v2905_v17 }
 0x3a8   :  { %v601_v20 = vmul.f32 0.35355338, %v501_v18 }
 0x3a9   :  { %v610_v23 = vadd.f32 %v602_v19, %v3440_v2 }
 0x3aa   :  { %v609_v21 = vadd.f32 %v601_v20, %v3445_v5 }
 0x3ab   :  { %v629_v24 = vsel %vm613_vm3, %v610_v23, -inf }
 0x3ac   :  { %v626_v22 = vsel %vm613_vm3, %v609_v21, -inf }
 0x3ad   :  { %627 = vmax.xlane.f32.xlu0 %v626_v22 }
 0x3b1   :  { %630 = vmax.xlane.f32.xlu0 %v629_v24 }
 0x3c0   :  { %v619_v25 = vpop.xlane.xlu1 %618 }
 0x3c1   :  { %v639_v26 = vsub.f32 %v606_v7, %v619_v25  ;;  %v616_v27 = vpop.xlane.xlu0 %615 }
 0x3c2   :  { %v638_v28 = vsub.f32 %v605_v8, %v616_v27 }
 0x3c3   :  { %v648_v29 = vmul.f32 1.442695, %v639_v26 }
 0x3c4   :  { %v646_v30 = vmul.f32 1.442695, %v638_v28 }
 0x3c5   :  { %3199 = vpow2.f32 %v648_v29 }
 0x3c6   :  { %3201 = vpow2.f32 %v646_v30 }
 0x3cf   :  { %v3460_v31 = vpop.eup %3199 }
 0x3d0   :  { %v3202_v32 = vpop.eup %3201  ;;  %v665_v33 = vsel %vm613_vm3, %v3460_v31, 0.0 }
 0x3d1   :  { %666 = vadd.xlane.f32.xlu0 %v665_v33  ;;  %v662_v34 = vsel %vm613_vm3, %v3202_v32, 0.0 }
 0x3d2   :  { %663 = vadd.xlane.f32.xlu1 %v662_v34 }
 0x417   :  { %v2912_v35 = vpop.f32.mrb[2].mxu0 }
 0x418   :  { %v588_v36 = vpop.f32.mrb[3].mxu0  ;;  %v604_v57 = vmul.f32 0.35355338, %v2912_v35 }
 0x419   :  { %v603_v55 = vmul.f32 0.35355338, %v588_v36 }
 0x41a   :  { %v612_v61 = vadd.f32 %v604_v57, %v3440_v2 }
 0x41b   :  { %v611_v59 = vadd.f32 %v603_v55, %v3445_v5 }
 0x41c   :  { %v635_v62 = vsel %vm613_vm3, %v612_v61, -inf }
 0x41d   :  { %v632_v60 = vsel %vm613_vm3, %v611_v59, -inf }
 0x43a   :  { %v628_v37 = vpop.xlane.xlu0 %627 }
 0x43b   :  { %v642_v38 = vsub.f32 %v609_v21, %v628_v37  ;;  %v62_v37 = vld [vmem:[%s3777_s7] sm:$0xff] }
 0x43d   :  { %v654_v39 = vmul.f32 1.442695, %v642_v38  ;;  %v64_v38 = vld [vmem:[%s3777_s7 + $0x10] sm:$0xff] }
 0x43e   :  { %v631_v40 = vpop.xlane.xlu0 %630 }
 0x43f   :  { %3203 = vpow2.f32 %v654_v39  ;;  %v643_v41 = vsub.f32 %v610_v23, %v631_v40 }
 0x441   :  { %v656_v43 = vmul.f32 1.442695, %v643_v41 }
 0x443   :  { %3205 = vpow2.f32 %v656_v43 }
 0x449   :  { %v3204_v44 = vpop.eup %3203 }
 0x44a   :  { %v674_v45 = vsel %vm613_vm3, %v3204_v44, 0.0 }
 0x44b   :  { %675 = vadd.xlane.f32.xlu1 %v674_v45 }
 0x44d   :  { %v3206_v46 = vpop.eup %3205 }
 0x44e   :  { %v677_v49 = vsel %vm613_vm3, %v3206_v46, 0.0 }
 0x44f   :  { %678 = vadd.xlane.f32.xlu0 %v677_v49 }
 0x45c   :  { %3180 = vrot.lane.b32.xlu1 %v3395_v42, %s3251_s2  ;;  %v608_v42 = vadd.f32 %v600_v54, %v3440_v2 }
 0x45e   :  { %v667_v63 = vpop.xlane.xlu0 %666 }
 0x45f   :  { %v664_v50 = vpop.xlane.xlu1 %663 }
 0x460   :  { %3207 = vrcp.f32 %v664_v50  ;;  %v1413_v50 = vld [vmem:[%s3778_s5 + $0x88] sm:$0xff] }
 0x461   :  { %3209 = vrcp.f32 %v667_v63  ;;  %v1414_v63 = vld [vmem:[%s3778_s5 + $0x90] sm:$0xff] }
 0x465   :  { %3185 = vrot.lane.b32.xlu0 %v3399_v47, %s3251_s2  ;;  %v623_v47 = vsel %vm613_vm3, %v608_v42, -inf }
 0x46a   :  { %v3208_v51 = vpop.eup %3207 }
 0x46b   :  { %v694_v52 = vmul.f32 %v3208_v51, %v3202_v32  ;;  %v3210_v8 = vpop.eup %3209 }
 0x46c   :  { %v695_v12 = vmul.f32 %v3210_v8, %v3460_v31  ;;  %v1398_v8 = vld [vmem:[%s3778_s5 + $0x10] sm:$0xff] }
 0x46d   :  { %2917 = vmatprep.mubr.msk.f32.mxu1 %vm613_vm3, %v694_v52 }
 0x480   :  { %621 = vmax.xlane.f32.xlu1 %v620_v58 }
 0x484   :  { %633 = vmax.xlane.f32.xlu1 %v632_v60  ;;  %624 = vmax.xlane.f32.xlu0 %v623_v47  ;;  %v1396_v47 = vld [vmem:[%s3778_s5] sm:$0xff] }
 0x488   :  { %636 = vmax.xlane.f32.xlu0 %v635_v62 }
 0x4d8   :  { %v676_v1 = vpop.xlane.xlu1 %675 }
 0x4d9   :  { %3211 = vrcp.f32 %v676_v1  ;;  %v1415_v1 = vld [vmem:[%s3778_s5 + $0x98] sm:$0xff] }
 0x4dc   :  { %v3181_v3 = vpop.permute.xlu1 %3180  ;;  %v679_v4 = vpop.xlane.xlu0 %678 }
 0x4dd   :  { %v3183_v5 = vunpack.i.h.bf16 %v3181_v3  ;;  %v3182_v6 = vunpack.i.l.bf16 %v3181_v3  ;;  %3213 = vrcp.f32 %v679_v4 }
 0x4df   :  { %v3096_v7 = vpack.c.bf16 %v3183_v5, %v3182_v6 }
 0x4e0   :  { %v3186_v9 = vpop.permute.xlu0 %3185 }
 0x4e1   :  { %v3188_v10 = vunpack.i.h.bf16 %v3186_v9  ;;  %v3187_v11 = vunpack.i.l.bf16 %v3186_v9  ;;  %3097 = vmatprep.subr.bf16.mxu1 %v3096_v7  ;;  %v1399_v9 = vld [vmem:[%s3778_s5 + $0x18] sm:$0xff] }
 0x4e2   :  { %3099 = vmatpush3.bf16.msra.mxu1 %v3096_v7  ;;  %v3116_v7 = vpack.c.bf16 %v1415_v1, %v1414_v63  ;;  %v2681_v63 = vld [vmem:[%s3773_s6 + $0x30] sm:$0xff]  ;;  %v2682_v1 = vld [vmem:[%s3773_s6 + $0x38] sm:$0xff] }
 0x4e3   :  { %v3212_v2 = vpop.eup %3211  ;;  %v3104_v13 = vpack.c.bf16 %v3188_v10, %v3187_v11  ;;  %v1416_v11 = vld [vmem:[%s3778_s5 + $0xa0] sm:$0xff] }
 0x4e4   :  { %v698_v14 = vmul.f32 %v3212_v2, %v3204_v44  ;;  %v1417_v2 = vld [vmem:[%s3778_s5 + $0xa8] sm:$0xff] }
 0x4e5   :  { %2918 = vmatmul.mubr.msk.f32.vlgmr.msra.gmra.mrb[8].mxu1 %vm613_vm3, %v695_v12  ;;  %3105 = vmatprep.subr.bf16.mxu0 %v3104_v13  ;;  %v1395_v12 = vld [vmem:[%s3779_s1 + $0x8] sm:$0xff] }
 0x4e6   :  { %3107 = vmatpush3.bf16.msra.mxu0 %v3104_v13  ;;  %2931 = vmatprep.mubr.msk.f32.mxu0 %vm613_vm3, %v698_v14  ;;  %v3118_v13 = vpack.c.bf16 %v1399_v9, %v1398_v8  ;;  %v3120_v14 = vpack.c.bf16 %v1417_v2, %v1416_v11 }
 0x4e7   :  { %v3214_v15 = vpop.eup %3213  ;;  %2941 = vmatprep.subr.mxu0 %v62_v37 }
 0x4e8   :  { %v699_v16 = vmul.f32 %v3214_v15, %v3206_v46  ;;  %v1400_v15 = vld [vmem:[%s3778_s5 + $0x20] sm:$0xff] }
 0x4ea   :  { %2932 = vmatmul.mubr.msk.f32.vlgmr.msra.gmra.mrb[4].mxu0 %vm613_vm3, %v699_v16  ;;  %v1401_v16 = vld [vmem:[%s3778_s5 + $0x28] sm:$0xff] }
 0x4eb   :  { %2942 = vmatpush3.msra.mxu0 %v62_v37 }
 0x4ec   :  { %2951 = vmatprep.subr.mxu0 %v64_v38 }
 0x50d   :  { %v622_v17 = vpop.xlane.xlu1 %621 }
 0x50e   :  { %v640_v18 = vsub.f32 %v607_v56, %v622_v17  ;;  %v1418_v17 = vld [vmem:[%s3778_s5 + $0xb0] sm:$0xff] }
 0x510   :  { %v650_v19 = vmul.f32 1.442695, %v640_v18  ;;  %v1419_v18 = vld [vmem:[%s3778_s5 + $0xb8] sm:$0xff] }
 0x511   :  { %v634_v20 = vpop.xlane.xlu1 %633  ;;  %v625_v21 = vpop.xlane.xlu0 %624 }
 0x512   :  { %3215 = vpow2.f32 %v650_v19  ;;  %v644_v22 = vsub.f32 %v611_v59, %v634_v20  ;;  %v641_v23 = vsub.f32 %v608_v42, %v625_v21  ;;  %v3122_v19 = vpack.c.bf16 %v1401_v16, %v1400_v15  ;;  %v1402_v21 = vld [vmem:[%s3778_s5 + $0x30] sm:$0xff] }
 0x513   :  { %v3124_v20 = vpack.c.bf16 %v1419_v18, %v1418_v17 }
 0x514   :  { %v658_v24 = vmul.f32 1.442695, %v644_v22  ;;  %v652_v25 = vmul.f32 1.442695, %v641_v23  ;;  %v1403_v22 = vld [vmem:[%s3778_s5 + $0x38] sm:$0xff]  ;;  %v1420_v23 = vld [vmem:[%s3778_s5 + $0xc0] sm:$0xff] }
 0x515   :  { %v637_v26 = vpop.xlane.xlu0 %636 }
 0x516   :  { %3217 = vpow2.f32 %v658_v24  ;;  %v645_v27 = vsub.f32 %v612_v61, %v637_v26  ;;  %v1397_v61 = vld [vmem:[%s3778_s5 + $0x8] sm:$0xff] }
 0x517   :  { %3219 = vpow2.f32 %v652_v25  ;;  %v3114_v5 = vpack.c.bf16 %v1397_v61, %v1396_v47  ;;  %v1421_v24 = vld [vmem:[%s3778_s5 + $0xc8] sm:$0xff]  ;;  %v3126_v25 = vpack.c.bf16 %v1403_v22, %v1402_v21 }
 0x518   :  { %v660_v28 = vmul.f32 1.442695, %v645_v27  ;;  %v3128_v26 = vpack.c.bf16 %v1421_v24, %v1420_v23  ;;  %v1404_v27 = vld [vmem:[%s3778_s5 + $0x40] sm:$0xff] }
 0x51a   :  { %3221 = vpow2.f32 %v660_v28  ;;  %v1405_v28 = vld [vmem:[%s3778_s5 + $0x48] sm:$0xff] }
 0x51c   :  { %v3216_v29 = vpop.eup %3215 }
 0x51d   :  { %v668_v30 = vsel %vm613_vm3, %v3216_v29, 0.0 }
 0x51e   :  { %669 = vadd.xlane.f32.xlu1 %v668_v30  ;;  %v1423_v30 = vld [vmem:[%s3778_s5 + $0xd8] sm:$0xff] }
 0x520   :  { %v3218_v31 = vpop.eup %3217 }
 0x521   :  { %v3220_v32 = vpop.eup %3219  ;;  %v680_v33 = vsel %vm613_vm3, %v3218_v31, 0.0 }
 0x522   :  { %681 = vadd.xlane.f32.xlu1 %v680_v33  ;;  %v671_v34 = vsel %vm613_vm3, %v3220_v32, 0.0  ;;  %v1406_v33 = vld [vmem:[%s3778_s5 + $0x50] sm:$0xff] }
 0x523   :  { %672 = vadd.xlane.f32.xlu0 %v671_v34  ;;  %v1407_v34 = vld [vmem:[%s3778_s5 + $0x58] sm:$0xff] }
 0x524   :  { %v3222_v35 = vpop.eup %3221  ;;  %v3134_v37 = vpack.c.bf16 %v1407_v34, %v1406_v33 }
 0x525   :  { %v683_v36 = vsel %vm613_vm3, %v3222_v35, 0.0 }
 0x527   :  { %684 = vadd.xlane.f32.xlu0 %v683_v36  ;;  %v1425_v36 = vld [vmem:[%s3778_s5 + $0xe8] sm:$0xff] }
 0x533   :  { %3190 = vrot.lane.b32.xlu1 %v3401_v48, %s3251_s2 }
 0x53d   :  { %3195 = vrot.lane.b32.xlu0 %v3421_v0, %s3251_s2  ;;  %v1412_v0 = vld [vmem:[%s3778_s5 + $0x80] sm:$0xff] }
 0x53e   :  { %v3112_v57 = vpack.c.bf16 %v1413_v50, %v1412_v0  ;;  %v1394_v0 = vld [vmem:[%s3779_s1] sm:$0xff]  ;;  %v63_v50 = vld [vmem:[%s3777_s7 + $0x8] sm:$0xff] }
 0x5ab   :  { %v670_v39 = vpop.xlane.xlu1 %669 }
 0x5ac   :  { %3223 = vrcp.f32 %v670_v39  ;;  %v1408_v39 = vld [vmem:[%s3778_s5 + $0x60] sm:$0xff] }
 0x5af   :  { %v682_v40 = vpop.xlane.xlu1 %681 }
 0x5b0   :  { %3225 = vrcp.f32 %v682_v40  ;;  %v673_v41 = vpop.xlane.xlu0 %672  ;;  %v1409_v40 = vld [vmem:[%s3778_s5 + $0x68] sm:$0xff] }
 0x5b1   :  { %3227 = vrcp.f32 %v673_v41  ;;  %v1426_v41 = vld [vmem:[%s3778_s5 + $0xf0] sm:$0xff] }
 0x5b3   :  { %v3191_v48 = vpop.permute.xlu1 %3190 }
 0x5b4   :  { %v3193_v43 = vunpack.i.h.bf16 %v3191_v48  ;;  %v3192_v44 = vunpack.i.l.bf16 %v3191_v48  ;;  %v685_v45 = vpop.xlane.xlu0 %684  ;;  %v1427_v48 = vld [vmem:[%s3778_s5 + $0xf8] sm:$0xff] }
 0x5b5   :  { %3229 = vrcp.f32 %v685_v45  ;;  %v1410_v45 = vld [vmem:[%s3778_s5 + $0x70] sm:$0xff] }
 0x5b6   :  { %v3224_v46 = vpop.eup %3223  ;;  %v3100_v49 = vpack.c.bf16 %v3193_v43, %v3192_v44  ;;  %v3138_v43 = vpack.c.bf16 %v1409_v40, %v1408_v39  ;;  %v3140_v44 = vpack.c.bf16 %v1427_v48, %v1426_v41 }
 0x5b7   :  { %v696_v51 = vmul.f32 %v3224_v46, %v3216_v29  ;;  %v1422_v29 = vld [vmem:[%s3778_s5 + $0xd0] sm:$0xff]  ;;  %v1411_v46 = vld [vmem:[%s3778_s5 + $0x78] sm:$0xff] }
 0x5b8   :  { %v3196_v52 = vpop.permute.xlu0 %3195  ;;  %v2919_v53 = vpop.f32.mrb[8].mxu1  ;;  %3101 = vmatprep.subr.bf16.mxu1 %v3100_v49 }
 0x5b9   :  { %v3198_v54 = vunpack.i.h.bf16 %v3196_v52  ;;  %v3197_v55 = vunpack.i.l.bf16 %v3196_v52  ;;  %v780_v56 = vpop.f32.mrb[9].mxu1  ;;  %3103 = vmatpush3.bf16.msra.mxu1 %v3100_v49  ;;  %2924 = vmatprep.mubr.msk.f32.mxu1 %vm613_vm3, %v696_v51  ;;  %v3142_v49 = vpack.c.bf16 %v1411_v46, %v1410_v45  ;;  %v65_v51 = vld [vmem:[%s3777_s7 + $0x18] sm:$0xff]  ;;  %v3252_v52 = vmov 0.0  }
 0x5ba   :  { %v3226_v58 = vpop.eup %3225  ;;  %2943 = vmatprep.mubr.msk.f32.mxu0 %vm252_vm1, %v780_v56 }
 0x5bb   :  { %v3228_v59 = vpop.eup %3227  ;;  %v3108_v42 = vpack.c.bf16 %v3198_v54, %v3197_v55  ;;  %2944 = vmatmul.mubr.msk.f32.vlgmr.msra.gmra.mrb[6].mxu0 %vm252_vm1, %v2919_v53  ;;  %v700_v60 = vmul.f32 %v3226_v58, %v3218_v31  ;;  %v3130_v31 = vpack.c.bf16 %v1405_v28, %v1404_v27  ;;  %v2680_v58 = vld [vmem:[%s3773_s6 + $0x28] sm:$0xff] }
 0x5bc   :  { %v697_v62 = vmul.f32 %v3228_v59, %v3220_v32  ;;  %2952 = vmatpush3.msra.mxu0 %v64_v38  ;;  %v3132_v32 = vpack.c.bf16 %v1423_v30, %v1422_v29 }
 0x5bd   :  { %3109 = vmatprep.subr.bf16.mxu1 %v3108_v42  ;;  %v2933_v3 = vpop.f32.mrb[4].mxu0  ;;  %3113 = vmatprep.subr.bf16.mxu0 %v3112_v57  ;;  %v2679_v57 = vld [vmem:[%s3773_s6 + $0x20] sm:$0xff] }
 0x5be   :  { %2925 = vmatmul.mubr.msk.f32.vlgmr.msra.gmra.mrb[10].mxu1 %vm613_vm3, %v697_v62  ;;  %v954_v4 = vpop.f32.mrb[5].mxu0  ;;  %v3145_v47 = vpack.c.bf16 %v2680_v58, %v2679_v57  ;;  %v3254_v62 = vmov 0.0|0.0  }
 0x5bf   :  { %v3230_v6 = vpop.eup %3229  ;;  %3111 = vmatpush3.bf16.msra.mxu1 %v3108_v42  ;;  %2938 = vmatprep.mubr.msk.f32.mxu1 %vm613_vm3, %v700_v60 }
 0x5c0   :  { %v701_v10 = vmul.f32 %v3230_v6, %v3222_v35  ;;  %2953 = vmatprep.mubr.msk.f32.mxu0 %vm252_vm1, %v954_v4  ;;  %v1424_v35 = vld [vmem:[%s3778_s5 + $0xe0] sm:$0xff]  ;;  %2946 = vmatprep.subr.mxu1 %v63_v50 }
 0x5c1   :  { %2954 = vmatmul.mubr.msk.f32.vlgmr.msra.gmra.mrb[8].mxu0 %vm252_vm1, %v2933_v3  ;;  %v3136_v38 = vpack.c.bf16 %v1425_v36, %v1424_v35  ;;  %v3148_v3 = vpack.c.bf16 %v2682_v1, %v2681_v63 }
 0x5c2   :  { %3115 = vmatpush3.bf16.msra.mxu0 %v3114_v5  ;;  %2939 = vmatmul.mubr.msk.f32.vlgmr.msra.gmra.mrb[12].mxu1 %vm613_vm3, %v701_v10  ;;  %v2687_v5 = vld [vmem:[%s3774_s8 + $0x1] ss:$0 sm:$0xff] }
 0x5c3   :  { %3117 = vmatprep.subr.bf16.mxu0 %v3116_v7  ;;  %1510 = vmatprep.mubr.f32.mxu0 %v1395_v12 }
 0x5c4   :  { %2947 = vmatpush3.msra.mxu1 %v63_v50 }
 0x5c5   :  { %2956 = vmatprep.subr.mxu1 %v65_v51 }
 0x5c6   :  { %3119 = vmatpush3.bf16.msra.mxu0 %v3118_v13 }
 0x5c7   :  { %3121 = vmatprep.subr.bf16.mxu0 %v3120_v14 }
 0x5ca   :  { %3123 = vmatpush3.bf16.msra.mxu0 %v3122_v19 }
 0x5cb   :  { %3125 = vmatprep.subr.bf16.mxu0 %v3124_v20 }
 0x5ce   :  { %3127 = vmatpush3.bf16.msra.mxu0 %v3126_v25 }
 0x5cf   :  { %3129 = vmatprep.subr.bf16.mxu0 %v3128_v26  ;;  %v2688_v26 = vld [vmem:[%s3775_s9 + $0x1] ss:$0 sm:$0xff] }
 0x5d2   :  { %3131 = vmatpush3.bf16.msra.mxu0 %v3130_v31 }
 0x5d3   :  { %3133 = vmatprep.subr.bf16.mxu0 %v3132_v32 }
 0x5d6   :  { %3135 = vmatpush3.bf16.msra.mxu0 %v3134_v37 }
 0x5d7   :  { %3137 = vmatprep.subr.bf16.mxu0 %v3136_v38  ;;  %v1441_v38 = vld [vmem:[%s3780_s3] sm:$0xff] }
 0x5da   :  { %3139 = vmatpush3.bf16.msra.mxu0 %v3138_v43 }
 0x5db   :  { %3141 = vmatprep.subr.bf16.mxu0 %v3140_v44 }
 0x5de   :  { %3143 = vmatpush3.bf16.msra.mxu0 %v3142_v49 }
 0x5df   :  { %3002 = vmatprep.subr.mxu0 %v3252_v52 }
 0x5e1   :  { %1511 = vmatmul.mubr.f32.vlgmr.msra.gmra.mrb[10].mxu0 %v1394_v0 }
 0x5e2   :  { %3004 = vmatprep.mubr.msk.f32.mxu0 %vm3253_vm4, %v3252_v52 }
 0x68e   :  { %v2945_v53 = vpop.f32.mrb[6].mxu0 }
 0x68f   :  { %v1122_v54 = vpop.f32.mrb[7].mxu0  ;;  %v1381_v10 = vsel %vm152_vm0, %v2945_v53, 0.0 }
 0x690   :  { %v1374_v12 = vsel %vm152_vm0, %v1122_v54, 0.0 }
 0x691   :  { %v2926_v55 = vpop.f32.mrb[10].mxu1 }
 0x692   :  { %v867_v56 = vpop.f32.mrb[11].mxu1 }
 0x693   :  { %2948 = vmatprep.mubr.msk.f32.mxu1 %vm252_vm1, %v867_v56 }
 0x694   :  { %2949 = vmatmul.mubr.msk.f32.vlgmr.msra.gmra.mrb[14].mxu1 %vm252_vm1, %v2926_v55  ;;  %v2955_v59 = vpop.f32.mrb[8].mxu0 }
 0x695   :  { %v2940_v42 = vpop.f32.mrb[12].mxu1  ;;  %v1284_v60 = vpop.f32.mrb[9].mxu0  ;;  %2957 = vmatpush3.msra.mxu1 %v65_v51  ;;  %v1384_v15 = vsel %vm152_vm0, %v2955_v59, 0.0 }
 0x696   :  { %v1041_v61 = vpop.f32.mrb[13].mxu1  ;;  %3144 = vmatprep.subr.bf16.mxu1 %v3254_v62  ;;  %v1377_v17 = vsel %vm152_vm0, %v1284_v60, 0.0 }
 0x697   :  { %2958 = vmatprep.mubr.msk.f32.mxu1 %vm252_vm1, %v1041_v61 }
 0x698   :  { %2959 = vmatmul.mubr.msk.f32.vlgmr.msra.gmra.mrb[16].mxu1 %vm252_vm1, %v2940_v42 }
 0x699   :  { %3146 = vmatpush3.bf16.msra.mxu1 %v3145_v47  ;;  %2969 = vmatprep.mubr.msk.f32.mxu1 %vm3253_vm4, %v3252_v52 }
 0x69a   :  { %3147 = vmatprep.subr.bf16.mxu1 %v3254_v62 }
 0x69d   :  { %3149 = vmatpush3.bf16.msra.mxu1 %v3148_v3 }
 0x69e   :  { %2972 = vmatprep.subr.mxu1 %v3252_v52 }
 0x6b4   :  { %v2807_v4 = vpop.f32.mrb[10].mxu0 }
 0x6b5   :  { %v2808_v6 = vpop.f32.mrb[11].mxu0 }
 0x6b6   :  { %v2809_v7 = vadd.f32 %v2808_v6, %v2807_v4 }
 0x6b8   :  { %v1513_v8 = vadd.f32 %v2809_v7, %v2687_v5 }
 0x6ba   :  { %2970 = vmatmul.mubr.msk.f32.vlgmr.msra.gmra.mrb[18].mxu1 %vm152_vm0, %v1513_v8 }
 0x6bb   :  { %2974 = vmatprep.mubr.msk.f32.mxu1 %vm3253_vm4, %v3252_v52 }
 0x767   :  { %v2950_v9 = vpop.f32.mrb[14].mxu1 }
 0x768   :  { %v1382_v11 = vsel %vm152_vm0, %v2950_v9, 0.0  ;;  %v1203_v2 = vpop.f32.mrb[15].mxu1 }
 0x769   :  { %v1383_v13 = vadd.f32 %v1382_v11, %v1381_v10  ;;  %v1375_v14 = vsel %vm152_vm0, %v1203_v2, 0.0 }
 0x76a   :  { %v1376_v16 = vadd.f32 %v1375_v14, %v1374_v12 }
 0x76b   :  { %v2960_v18 = vpop.f32.mrb[16].mxu1  ;;  %v1385_v19 = vadd.f32 %v1384_v15, %v1383_v13 }
 0x76c   :  { %v1386_v20 = vsel %vm152_vm0, %v2960_v18, 0.0  ;;  %v1365_v21 = vpop.f32.mrb[17].mxu1  ;;  %v1378_v22 = vadd.f32 %v1377_v17, %v1376_v16 }
 0x76d   :  { %v3649_v23 = vadd.f32 %v1386_v20, %v1385_v19  ;;  %v1379_v24 = vsel %vm152_vm0, %v1365_v21, 0.0 }
 0x76e   :  { %v3652_v25 = vadd.f32 %v1379_v24, %v1378_v22 }
 0x78d   :  { %v1589_v27 = vpop.f32.mrb[18].mxu1 }
 0x78e   :  { %v1590_v28 = vadd.f32 %v2688_v26, %v1589_v27  ;;  %v2971_v29 = vpop.f32.mrb[19].mxu1 }
 0x790   :  { %1598 = vrot.lane.b32.xlu0 %v1590_v28, %s3250_s28  ;;  %1594 = vrot.lane.b32.xlu1 %v1590_v28, %s3248_s26 }
 0x794   :  { %1596 = vrot.lane.b32.xlu1 %v1590_v28, %s3247_s25 }
 0x798   :  { %1600 = vrot.lane.b32.xlu1 %v1590_v28, %s3249_s27 }
 0x802   :  { %v1595_v30 = vpop.permute.xlu1 %1594  ;;  %v3662_v31 = vpop.permute.xlu0 %1598 }
 0x803   :  { %1676 = vrot.lane.b32.xlu0 %v1595_v30, %s3249_s27 }
 0x806   :  { %v3664_v32 = vpop.permute.xlu1 %1596 }
 0x807   :  { %1828 = vrot.lane.b32.xlu0 %v3662_v31, %s3249_s27  ;;  %1752 = vrot.lane.b32.xlu1 %v3664_v32, %s3249_s27 }
 0x80a   :  { %v1601_v33 = vpop.permute.xlu1 %1600 }
 0x80b   :  { %2973 = vmatpush3.xpose.msk.msra.mxu1 %vm252_vm1, %v1601_v33 }
 0x80c   :  { %2977 = vmatprep.subr.mxu1 %v3252_v52 }
 0x80e   :  { %2975 = vmatmul.mubr.msk.f32.vlgmr.msra.gmra.mrb[20].mxu1 %vm252_vm1, %v1590_v28 }
 0x80f   :  { %2979 = vmatprep.mubr.msk.f32.mxu1 %vm3253_vm4, %v3252_v52 }
 0x875   :  { %v1677_v34 = vpop.permute.xlu0 %1676 }
 0x876   :  { %2978 = vmatpush3.xpose.msk.msra.mxu1 %vm252_vm1, %v1677_v34  ;;  %v2684_v34 = vld [vmem:[%s3777_s7 + $0x28] sm:$0xff] }
 0x877   :  { %2982 = vmatprep.subr.mxu1 %v3252_v52 }
 0x879   :  { %2980 = vmatmul.mubr.msk.f32.vlgmr.msra.gmra.mrb[22].mxu1 %vm252_vm1, %v1595_v30  ;;  %v1753_v35 = vpop.permute.xlu1 %1752  ;;  %v1829_v36 = vpop.permute.xlu0 %1828 }
 0x87a   :  { %2983 = vmatpush3.xpose.msk.msra.mxu1 %vm252_vm1, %v1753_v35  ;;  %2984 = vmatprep.mubr.msk.f32.mxu1 %vm3253_vm4, %v3252_v52  ;;  %v2685_v35 = vld [vmem:[%s3777_s7 + $0x30] sm:$0xff] }
 0x87b   :  { %2987 = vmatprep.subr.mxu1 %v3252_v52 }
 0x87d   :  { %2985 = vmatmul.mubr.msk.f32.vlgmr.msra.gmra.mrb[24].mxu1 %vm252_vm1, %v3664_v32 }
 0x87e   :  { %2988 = vmatpush3.xpose.msk.msra.mxu1 %vm252_vm1, %v1829_v36  ;;  %2989 = vmatprep.mubr.msk.f32.mxu1 %vm3253_vm4, %v3252_v52 }
 0x87f   :  { %2992 = vmatprep.subr.mxu1 %v3252_v52 }
 0x881   :  { %2990 = vmatmul.mubr.msk.f32.vlgmr.msra.gmra.mrb[26].mxu1 %vm252_vm1, %v3662_v31 }
 0x882   :  { %2994 = vmatprep.mubr.msk.f32.mxu1 %vm3253_vm4, %v3252_v52 }
 0x8e1   :  { %v1672_v37 = vpop.f32.mrb[20].mxu1 }
 0x8e2   :  { %v1904_v39 = vmul.f32 0.35355338, %v1672_v37  ;;  %v2976_v40 = vpop.f32.mrb[21].mxu1 }
 0x8e4   :  { %v1908_v41 = vadd.f32 %v1904_v39, %v1441_v38 }
 0x8e6   :  { %v1912_v48 = vsel %vm252_vm1, %v1908_v41, -inf }
 0x8e7   :  { %1913 = vmax.xlane.f32.xlu1 %v1912_v48 }
 0x94c   :  { %v1748_v43 = vpop.f32.mrb[22].mxu1 }
 0x94d   :  { %v1905_v44 = vmul.f32 0.35355338, %v1748_v43  ;;  %v2981_v45 = vpop.f32.mrb[23].mxu1 }
 0x94f   :  { %v1909_v46 = vadd.f32 %v1905_v44, %v1441_v38 }
 0x950   :  { %v1824_v49 = vpop.f32.mrb[24].mxu1 }
 0x951   :  { %v1906_v0 = vmul.f32 0.35355338, %v1824_v49  ;;  %v2986_v50 = vpop.f32.mrb[25].mxu1  ;;  %v1915_v51 = vsel %vm252_vm1, %v1909_v46, -inf }
 0x952   :  { %1916 = vmax.xlane.f32.xlu0 %v1915_v51 }
 0x953   :  { %v1910_v53 = vadd.f32 %v1906_v0, %v1441_v38 }
 0x954   :  { %v1900_v54 = vpop.f32.mrb[26].mxu1 }
 0x955   :  { %v1907_v55 = vmul.f32 0.35355338, %v1900_v54  ;;  %v2991_v56 = vpop.f32.mrb[27].mxu1  ;;  %v1918_v57 = vsel %vm252_vm1, %v1910_v53, -inf }
 0x956   :  { %1919 = vmax.xlane.f32.xlu0 %v1918_v57 }
 0x957   :  { %v1911_v58 = vadd.f32 %v1907_v55, %v1441_v38  ;;  %v2686_v38 = vld [vmem:[%s3777_s7 + $0x38] sm:$0xff] }
 0x959   :  { %v1921_v59 = vsel %vm252_vm1, %v1911_v58, -inf }
 0x95a   :  { %1922 = vmax.xlane.f32.xlu1 %v1921_v59 }
 0x96b   :  { %2032 = vrot.lane.b32.xlu1 %v1595_v30, %s3251_s2 }
 0x96c   :  { %1956 = vrot.lane.b32.xlu0 %v1590_v28, %s3251_s2 }
 0x974   :  { %v1914_v42 = vpop.xlane.xlu1 %1913 }
 0x975   :  { %v1924_v60 = vsub.f32 %v1908_v41, %v1914_v42  ;;  %v2706_v42 = vld [vmem:[%s3781_s10 + $0x1] ss:$0 sm:$0xff] }
 0x977   :  { %v1928_v47 = vmul.f32 1.442695, %v1924_v60 }
 0x979   :  { %3231 = vpow2.f32 %v1928_v47 }
 0x983   :  { %v3232_v61 = vpop.eup %3231 }
 0x984   :  { %v1936_v62 = vsel %vm252_vm1, %v3232_v61, 0.0 }
 0x98b   :  { %1937 = vadd.xlane.f32.xlu0 %v1936_v62  ;;  %v2678_v62 = vld [vmem:[%s3781_s10] ss:$0 sm:$0xff]  ;;  %s3255_s10 = smov 32  }
 0x9df   :  { %v1917_v63 = vpop.xlane.xlu0 %1916 }
 0x9e0   :  { %v1925_v1 = vsub.f32 %v1909_v46, %v1917_v63 }
 0x9e2   :  { %v1930_v3 = vmul.f32 1.442695, %v1925_v1 }
 0x9e3   :  { %v1920_v4 = vpop.xlane.xlu0 %1919 }
 0x9e4   :  { %3233 = vpow2.f32 %v1930_v3  ;;  %v1926_v5 = vsub.f32 %v1910_v53, %v1920_v4  ;;  %v2564_v53 = vlaneseq }
 0x9e6   :  { %v1932_v6 = vmul.f32 1.442695, %v1926_v5  ;;  %v2565_v57 = vshrl.u32 %v2564_v53, 7 }
 0x9e7   :  { %v1957_v7 = vpop.permute.xlu0 %1956  ;;  %v1923_v8 = vpop.xlane.xlu1 %1922 }
 0x9e8   :  { %3235 = vpow2.f32 %v1932_v6  ;;  %v1927_v9 = vsub.f32 %v1911_v58, %v1923_v8  ;;  %2993 = vmatpush3.msra.mxu1 %v1957_v7  ;;  %v2571_v1 = vsub.s32 1, %v2565_v57  ;;  %v2614_v3 = vsub.s32 6, %v2565_v57 }
 0x9e9   :  { %2997 = vmatprep.subr.mxu1 %v3252_v52  ;;  %v2576_v4 = vsub.s32 2, %v2565_v57  ;;  %v2619_v5 = vsub.s32 7, %v2565_v57  ;;  %v2581_v6 = vsub.s32 3, %v2565_v57  ;;  %v2604_v7 = vsub.s32 4, %v2565_v57 }
 0x9ea   :  { %v1934_v10 = vmul.f32 1.442695, %v1927_v9  ;;  %v2566_v8 = vsub.s32 0, %v2565_v57 }
 0x9eb   :  { %v2033_v19 = vpop.permute.xlu1 %2032 }
 0x9ec   :  { %3237 = vpow2.f32 %v1934_v10  ;;  %v1393_v10 = vadd.f32 %v2678_v62, %v3649_v23 }
 0x9ee   :  { %v3234_v11 = vpop.eup %3233 }
 0x9ef   :  { %v1939_v2 = vsel %vm252_vm1, %v3234_v11, 0.0 }
 0x9f0   :  { %1940 = vadd.xlane.f32.xlu1 %v1939_v2 }
 0x9f2   :  { %v3236_v12 = vpop.eup %3235 }
 0x9f3   :  { %v1942_v13 = vsel %vm252_vm1, %v3236_v12, 0.0 }
 0x9f4   :  { %1943 = vadd.xlane.f32.xlu0 %v1942_v13 }
 0x9f6   :  { %v3238_v14 = vpop.eup %3237 }
 0x9f7   :  { %v1945_v15 = vsel %vm252_vm1, %v3238_v14, 0.0 }
 0x9f8   :  { %1946 = vadd.xlane.f32.xlu1 %v1945_v15 }
 0xa09   :  { %2108 = vrot.lane.b32.xlu1 %v3664_v32, %s3251_s2 }
 0xa0a   :  { %2184 = vrot.lane.b32.xlu0 %v3662_v31, %s3251_s2  ;;  %v2683_v31 = vld [vmem:[%s3777_s7 + $0x20] sm:$0xff] }
 0xa18   :  { %v1938_v16 = vpop.xlane.xlu0 %1937 }
 0xa19   :  { %3239 = vrcp.f32 %v1938_v16 }
 0xa23   :  { %v3240_v17 = vpop.eup %3239 }
 0xa24   :  { %v1952_v18 = vmul.f32 %v3240_v17, %v3232_v61  ;;  %v2609_v61 = vsub.s32 5, %v2565_v57 }
 0xa26   :  { %2995 = vmatmul.mubr.msk.f32.vlgmr.msra.gmra.mrb[28].mxu1 %vm252_vm1, %v1952_v18 }
 0xa27   :  { %2998 = vmatpush3.msra.mxu1 %v2033_v19  ;;  %2999 = vmatprep.mubr.msk.f32.mxu1 %vm3253_vm4, %v3252_v52 }
 0xa28   :  { %3007 = vmatprep.subr.mxu1 %v3252_v52 }
 0xa7d   :  { %v1941_v20 = vpop.xlane.xlu1 %1940 }
 0xa7e   :  { %3241 = vrcp.f32 %v1941_v20 }
 0xa81   :  { %v1944_v21 = vpop.xlane.xlu0 %1943 }
 0xa82   :  { %3243 = vrcp.f32 %v1944_v21 }
 0xa85   :  { %v1947_v22 = vpop.xlane.xlu1 %1946  ;;  %v2185_v28 = vpop.permute.xlu0 %2184 }
 0xa86   :  { %3245 = vrcp.f32 %v1947_v22 }
 0xa88   :  { %v3242_v24 = vpop.eup %3241 }
 0xa89   :  { %v1953_v26 = vmul.f32 %v3242_v24, %v3234_v11  ;;  %v2109_v27 = vpop.permute.xlu1 %2108  ;;  %v1392_v11 = vadd.f32 %v2678_v62, %v3652_v25 }
 0xa8a   :  { %3003 = vmatpush3.msra.mxu0 %v2109_v27 }
 0xa8b   :  { %3000 = vmatmul.mubr.msk.f32.vlgmr.msra.gmra.mrb[30].mxu1 %vm252_vm1, %v1953_v26  ;;  %3012 = vmatprep.subr.mxu0 %v3252_v52 }
 0xa8c   :  { %v3244_v29 = vpop.eup %3243  ;;  %3008 = vmatpush3.msra.mxu1 %v2185_v28  ;;  %3009 = vmatprep.mubr.msk.f32.mxu1 %vm3253_vm4, %v3252_v52 }
 0xa8d   :  { %v1954_v30 = vmul.f32 %v3244_v29, %v3236_v12  ;;  %3017 = vmatprep.subr.mxu1 %v3252_v52 }
 0xa8f   :  { %3005 = vmatmul.mubr.msk.f32.vlgmr.msra.gmra.mrb[12].mxu0 %vm252_vm1, %v1954_v30 }
 0xa90   :  { %v3246_v32 = vpop.eup %3245  ;;  %3013 = vmatpush3.msra.mxu0 %v2683_v31  ;;  %3014 = vmatprep.mubr.msk.f32.mxu0 %vm3253_vm4, %v3252_v52 }
 0xa91   :  { %v1955_v33 = vmul.f32 %v3246_v32, %v3238_v14  ;;  %3022 = vmatprep.subr.mxu0 %v3252_v52 }
 0xa93   :  { %3010 = vmatmul.mubr.msk.f32.vlgmr.msra.gmra.mrb[32].mxu1 %vm252_vm1, %v1955_v33 }
 0xa94   :  { %3019 = vmatprep.mubr.msk.f32.mxu1 %vm3253_vm4, %v3252_v52  ;;  %3018 = vmatpush3.msra.mxu1 %v2684_v34 }
 0xa95   :  { %3027 = vmatprep.subr.mxu1 %v3252_v52 }
 0xaf9   :  { %v2028_v36 = vpop.f32.mrb[28].mxu1 }
 0xafa   :  { %v2996_v37 = vpop.f32.mrb[29].mxu1  ;;  %3015 = vmatmul.mubr.msk.f32.vlgmr.msra.gmra.mrb[14].mxu0 %vm252_vm1, %v2028_v36 }
 0xafb   :  { %3023 = vmatpush3.msra.mxu0 %v2685_v35  ;;  %3024 = vmatprep.mubr.msk.f32.mxu0 %vm3253_vm4, %v3252_v52 }
 0xb5e   :  { %v2104_v39 = vpop.f32.mrb[30].mxu1 }
 0xb5f   :  { %v3001_v40 = vpop.f32.mrb[31].mxu1  ;;  %3020 = vmatmul.mubr.msk.f32.vlgmr.msra.gmra.mrb[34].mxu1 %vm252_vm1, %v2104_v39 }
 0xb60   :  { %3028 = vmatpush3.msra.mxu1 %v2686_v38  ;;  %3029 = vmatprep.mubr.msk.f32.mxu1 %vm3253_vm4, %v3252_v52 }
 0xb62   :  { %v2180_v41 = vpop.f32.mrb[12].mxu0 }
 0xb63   :  { %v3006_v48 = vpop.f32.mrb[13].mxu0  ;;  %3025 = vmatmul.mubr.msk.f32.vlgmr.msra.gmra.mrb[16].mxu0 %vm252_vm1, %v2180_v41 }
 0xb66   :  { %v2256_v43 = vpop.f32.mrb[32].mxu1 }
 0xb67   :  { %v3011_v44 = vpop.f32.mrb[33].mxu1  ;;  %3030 = vmatmul.mubr.msk.f32.vlgmr.msra.gmra.mrb[36].mxu1 %vm252_vm1, %v2256_v43 }
 0xbcd   :  { %v2329_v45 = vpop.f32.mrb[14].mxu0 }
 0xbce   :  { %v3016_v46 = vpop.f32.mrb[15].mxu0  ;;  %v2552_v0 = vsel %vm152_vm0, %v2329_v45, 0.0 }
 0xc32   :  { %v2402_v49 = vpop.f32.mrb[34].mxu1 }
 0xc33   :  { %v2553_v50 = vsel %vm152_vm0, %v2402_v49, 0.0  ;;  %v3021_v51 = vpop.f32.mrb[35].mxu1 }
 0xc34   :  { %v2554_v54 = vadd.f32 %v2553_v50, %v2552_v0 }
 0xc36   :  { %v2475_v55 = vpop.f32.mrb[16].mxu0 }
 0xc37   :  { %v2555_v52 = vsel %vm152_vm0, %v2475_v55, 0.0  ;;  %v3026_v56 = vpop.f32.mrb[17].mxu0 }
 0xc38   :  { %v2556_v58 = vadd.f32 %v2555_v52, %v2554_v54 }
 0xc3a   :  { %v2548_v59 = vpop.f32.mrb[36].mxu1 }
 0xc3b   :  { %v2557_v60 = vsel %vm152_vm0, %v2548_v59, 0.0  ;;  %v3031_v47 = vpop.f32.mrb[37].mxu1 }
 0xc3c   :  { %v2558_v63 = vadd.f32 %v2557_v60, %v2556_v58 }
 0xc3e   :  { %v2563_v9 = vadd.f32 %v2706_v42, %v2558_v63 }
 0xc40   :  { %v2610_v2 = vrot.slane %v2563_v9, %v2609_v61  ;;  %v2572_v12 = vrot.slane %v2563_v9, %v2571_v1  ;;  %v2615_v13 = vrot.slane %v2563_v9, %v2614_v3  ;;  %v2577_v14 = vrot.slane %v2563_v9, %v2576_v4 }
 0xc41   :  { %v2620_v15 = vrot.slane %v2563_v9, %v2619_v5  ;;  %v2582_v16 = vrot.slane %v2563_v9, %v2581_v6  ;;  %v2605_v17 = vrot.slane %v2563_v9, %v2604_v7  ;;  %v2567_v18 = vrot.slane %v2563_v9, %v2566_v8 }
 0xc42   :  { %v2611_v19 = vadd.f32 %v2610_v2, %v1393_v10  ;;  %v2573_v20 = vadd.f32 %v2572_v12, %v1392_v11  ;;  %v2616_v21 = vadd.f32 %v2615_v13, %v1393_v10  ;;  %v2578_v22 = vadd.f32 %v2577_v14, %v1392_v11 }
 0xc43   :  { %v2621_v24 = vadd.f32 %v2620_v15, %v1393_v10  ;;  %v2583_v26 = vadd.f32 %v2582_v16, %v1392_v11  ;;  %v2606_v27 = vadd.f32 %v2605_v17, %v1393_v10  ;;  %v2568_v28 = vadd.f32 %v2567_v18, %v1392_v11 }
 0xc44   :  { %2623 = vrot.lane.b32.xlu0 %v2611_v19, %s3255_s10  ;;  %2585 = vrot.lane.b32.xlu1 %v2573_v20, %s3255_s10 }
 0xc48   :  { %2627 = vrot.lane.b32.xlu0 %v2616_v21, %s3251_s2  ;;  %2589 = vrot.lane.b32.xlu1 %v2578_v22, %s3251_s2 }
 0xc4c   :  { %2631 = vrot.lane.b32.xlu0 %v2621_v24, %s3249_s27  ;;  %2593 = vrot.lane.b32.xlu1 %v2583_v26, %s3249_s27 }
 0xcb6   :  { %v2624_v23 = vpop.permute.xlu0 %2623  ;;  %v2586_v25 = vpop.permute.xlu1 %2585 }
 0xcb7   :  { %v2634_v31 = vsel %vm152_vm0, %v2606_v27, %v2624_v23  ;;  %v2596_v32 = vsel %vm152_vm0, %v2568_v28, %v2586_v25 }
 0xcba   :  { %v2628_v29 = vpop.permute.xlu0 %2627  ;;  %v2590_v30 = vpop.permute.xlu1 %2589 }
 0xcbb   :  { %v2635_v33 = vsel %vm2597_vm5, %v2634_v31, %v2628_v29  ;;  %v2598_v34 = vsel %vm2597_vm5, %v2596_v32, %v2590_v30 }
 0xcbe   :  { %v2632_v35 = vpop.permute.xlu0 %2631  ;;  %v2594_v36 = vpop.permute.xlu1 %2593 }
 0xcbf   :  { %v2636_v37 = vsel %vm2599_vm6, %v2635_v33, %v2632_v35  ;;  %v2600_v38 = vsel %vm2599_vm6, %v2598_v34, %v2594_v36 }
 0xcc0   :  { %2637 = vst [vmem:[%s3782_s11 + $0x8] sm:$0xff] %v2636_v37  ;;  %2601 = vst [vmem:[%s3782_s11] sm:$0xff] %v2600_v38 }

</bundles_post_ra>
